<compile_context>
chip_gen: v7x
topology: tpu7x:2x2x1
jax: 0.10.0
libtpu: 0.0.40
codegen_flags: <defaults>
</compile_context>

<pallas_src>
import functools
import math

import jax
import jax.numpy as jnp
from jax import lax
from jax.experimental import pallas as pl
from jax.experimental.pallas import tpu as pltpu


# ---------------------------------------------------------------------------
# config (small, TPU-friendly shapes)
# ---------------------------------------------------------------------------
class Config:
    vocab_size = 256
    hidden_size = 128
    num_layers = 2
    num_heads = 2
    max_position_embeddings = 16
    use_summary_attention = False
    ln_eps = 1e-5


# ---------------------------------------------------------------------------
# in-kernel helpers
# ---------------------------------------------------------------------------
def _layernorm(h, g, b, eps):
    mu = jnp.mean(h, axis=-1, keepdims=True)
    var = jnp.mean((h - mu) ** 2, axis=-1, keepdims=True)
    return (h - mu) * lax.rsqrt(var + eps) * g + b


# ---------------------------------------------------------------------------
# kernel 1: the WHOLE transformer stack in one pallas_call.
#   grid = (num_layers,)  -- "arbitrary" (sequential) layer axis.
#   x stays resident in a VMEM scratch carry; per-layer weights (stacked on a
#   leading L axis) are pipelined in by BlockSpec; the final LayerNorm is
#   applied at the last layer so the output is the post-ln_f hidden state.
#   QKV is one (H,3H) matmul; heads share a single (H,H) output projection.
# ---------------------------------------------------------------------------
def gpt2_stack_kernel(x_ref, bias_ref, lnfg, lnfb,
                      ln1g, ln1b, wqkv, bqkv, wo, bo,
                      ln2g, ln2b, wfc, bfc, wpj, bpj,
                      o_ref, xbuf, *, B, T, num_heads, eps):
    l = pl.program_id(0)
    nl = pl.num_programs(0)

    @pl.when(l == 0)
    def _():
        xbuf[...] = x_ref[...]

    x = xbuf[...]                                   # (N, H) f32, N = B*T
    N, H = x.shape
    hd = H // num_heads
    scale = 1.0 / math.sqrt(hd)

    # --- attention (pre-LN) ---
    h1 = _layernorm(x, ln1g[0], ln1b[0], eps)
    qkv = jnp.dot(h1.astype(jnp.bfloat16), wqkv[0],
                  preferred_element_type=jnp.float32) + bqkv[0]   # (N, 3H) f32
    q = (qkv[:, :H] * scale).reshape(B, T, H)       # scale folded into Q once
    k = qkv[:, H:2 * H].reshape(B, T, H)
    v = qkv[:, 2 * H:].reshape(B, T, H)
    bias = bias_ref[...]                            # (B, T, T) f32: causal+pad

    heads = []
    for h in range(num_heads):
        sl = slice(h * hd, (h + 1) * hd)
        qh = q[:, :, sl].astype(jnp.bfloat16)
        kh = k[:, :, sl].astype(jnp.bfloat16)
        vh = v[:, :, sl].astype(jnp.bfloat16)
        s = jnp.einsum("btd,bsd->bts", qh, kh,
                       preferred_element_type=jnp.float32) + bias
        # softmax: max-subtract / exp / EUP reciprocal (scores stay f32)
        m = jnp.max(s, axis=-1, keepdims=True)
        e = jnp.exp(s - m)
        p = e * pl.reciprocal(jnp.sum(e, axis=-1, keepdims=True), approx=True)
        heads.append(jnp.einsum("bts,bsd->btd", p.astype(jnp.bfloat16), vh,
                                preferred_element_type=jnp.float32))
    ctx = jnp.concatenate(heads, axis=-1).reshape(N, H)           # f32
    attn = jnp.dot(ctx.astype(jnp.bfloat16), wo[0],
                   preferred_element_type=jnp.float32) + bo[0]
    x1 = x + attn

    # --- MLP (pre-LN) ---
    h2 = _layernorm(x1, ln2g[0], ln2b[0], eps)
    m1 = jnp.dot(h2.astype(jnp.bfloat16), wfc[0],
                 preferred_element_type=jnp.float32) + bfc[0]
    m1 = jax.nn.gelu(m1, approximate=True)          # GPT-2 "gelu_new"
    m2 = jnp.dot(m1.astype(jnp.bfloat16), wpj[0],
                 preferred_element_type=jnp.float32) + bpj[0]
    xn = x1 + m2

    xbuf[...] = xn                                  # carry to next layer

    @pl.when(l == nl - 1)
    def _():
        # final LayerNorm -> post-ln_f last_hidden_state
        o_ref[...] = _layernorm(xn, lnfg[...], lnfb[...], eps).astype(o_ref.dtype)


def run_gpt2_stack(x, attn_bias, stack, lnfg, lnfb, *, B, T, num_heads, eps):
    N, H = x.shape
    L, _, H3 = stack["wqkv"].shape
    F = stack["wfc"].shape[2]

    def const(shape):
        return pl.BlockSpec(shape, lambda l: (0,) * len(shape))

    def per_layer(shape):
        return pl.BlockSpec(shape, lambda l: (l, 0, 0))

    in_specs = [
        const((N, H)),                                  # x (loaded once)
        const((B, T, T)),                               # additive attention bias
        const((1, H)), const((1, H)),                   # final LN g, b
        per_layer((1, 1, H)), per_layer((1, 1, H)),     # ln1 g, b
        per_layer((1, H, H3)), per_layer((1, 1, H3)),   # wqkv, bqkv
        per_layer((1, H, H)), per_layer((1, 1, H)),     # wo, bo
        per_layer((1, 1, H)), per_layer((1, 1, H)),     # ln2 g, b
        per_layer((1, H, F)), per_layer((1, 1, F)),     # wfc, bfc
        per_layer((1, F, H)), per_layer((1, 1, H)),     # wproj, bproj
    ]
    kernel = functools.partial(gpt2_stack_kernel, B=B, T=T,
                               num_heads=num_heads, eps=eps)
    return pl.pallas_call(
        kernel,
        grid=(L,),
        in_specs=in_specs,
        out_specs=pl.BlockSpec((N, H), lambda l: (0, 0)),
        out_shape=jax.ShapeDtypeStruct((N, H), jnp.float32),
        scratch_shapes=[pltpu.VMEM((N, H), jnp.float32)],
        compiler_params=pltpu.CompilerParams(dimension_semantics=("arbitrary",)),
    )(x, attn_bias, lnfg, lnfb,
      stack["ln1g"], stack["ln1b"], stack["wqkv"], stack["bqkv"],
      stack["wo"], stack["bo"], stack["ln2g"], stack["ln2b"],
      stack["wfc"], stack["bfc"], stack["wpj"], stack["bpj"])


# ---------------------------------------------------------------------------
# kernel 2: tied lm_head fused with shifted cross-entropy.
#   grid = (row_tiles, vocab_tiles); vocab innermost ("arbitrary" reduction),
#   rows "parallel" (independent per tile -> megacore-shardable on v7x).
#   wte is passed as (V, H) -- the H axis is contracted in-kernel (no host
#   transpose); the CE uses online logsumexp + in-tile label extraction, so
#   logits never round-trip HBM for the loss; per-row NLL is emitted and the
#   tiny mean reduction happens in the wrapper. Logit tiles are lane-dense
#   (TV multiple of 128 when possible).
# ---------------------------------------------------------------------------
def lm_head_ce_kernel(h_ref, wte_ref, lab_ref, logits_ref, nll_ref,
                      hb_sc, m_sc, l_sc, lbl_sc, *, tv):
    v = pl.program_id(1)
    nv = pl.num_programs(1)

    @pl.when(v == 0)
    def _():
        hb_sc[...] = h_ref[...].astype(hb_sc.dtype)        # bf16 matmul input
        m_sc[...] = jnp.full_like(m_sc, -jnp.inf)
        l_sc[...] = jnp.zeros_like(l_sc)
        lbl_sc[...] = jnp.zeros_like(lbl_sc)

    # logits tile (ROWS, TV) = hidden @ wte_tile^T  (contract H on the MXU)
    logits = lax.dot_general(
        hb_sc[...], wte_ref[...].astype(hb_sc.dtype),
        dimension_numbers=(((1,), (1,)), ((), ())),
        preferred_element_type=jnp.float32)
    logits_ref[...] = logits

    lab = lab_ref[...]                                     # (ROWS, 1) int32
    # online logsumexp across vocab tiles (f32)
    m_prev = m_sc[...]
    m_new = jnp.maximum(m_prev, jnp.max(logits, axis=-1, keepdims=True))
    l_sc[...] = (l_sc[...] * jnp.exp(m_prev - m_new)
                 + jnp.sum(jnp.exp(logits - m_new), axis=-1, keepdims=True))
    m_sc[...] = m_new
    # label-logit extraction within this vocab tile
    col = v * tv + lax.broadcasted_iota(jnp.int32, logits.shape, 1)
    lbl_sc[...] += jnp.sum(jnp.where(col == lab, logits, 0.0),
                           axis=-1, keepdims=True)

    @pl.when(v == nv - 1)
    def _():
        valid = (lab >= 0).astype(jnp.float32)             # drop shift-pad rows
        nll_ref[...] = (m_sc[...] + jnp.log(l_sc[...]) - lbl_sc[...]) * valid


def run_lm_head_ce(hidden, wte, lab_flat):
    N, H = hidden.shape
    V = wte.shape[0]
    ROWS = 128 if N % 128 == 0 else N
    TV = 128 if V % 128 == 0 else V
    grid = (N // ROWS, V // TV)

    kernel = functools.partial(lm_head_ce_kernel, tv=TV)
    logits, nll = pl.pallas_call(
        kernel,
        grid=grid,
        in_specs=[
            pl.BlockSpec((ROWS, H), lambda r, v: (r, 0)),   # hidden rows
            pl.BlockSpec((TV, H), lambda r, v: (v, 0)),     # wte vocab tile
            pl.BlockSpec((ROWS, 1), lambda r, v: (r, 0)),   # shifted labels
        ],
        out_specs=(
            pl.BlockSpec((ROWS, TV), lambda r, v: (r, v)),  # logits tile
            pl.BlockSpec((ROWS, 1), lambda r, v: (r, 0)),   # per-row NLL
        ),
        out_shape=(
            jax.ShapeDtypeStruct((N, V), jnp.float32),
            jax.ShapeDtypeStruct((N, 1), jnp.float32),
        ),
        scratch_shapes=[
            pltpu.VMEM((ROWS, H), jnp.bfloat16),   # bf16 hidden for MXU
            pltpu.VMEM((ROWS, 1), jnp.float32),    # running max
            pltpu.VMEM((ROWS, 1), jnp.float32),    # running sum-exp
            pltpu.VMEM((ROWS, 1), jnp.float32),    # label logit
        ],
        compiler_params=pltpu.CompilerParams(
            dimension_semantics=("parallel", "arbitrary")),
    )(hidden, wte, lab_flat)
    return logits, nll


# ---------------------------------------------------------------------------
# parameter init (deterministic, synthetic; layer weights stacked on L axis,
# big matmul weights stored bf16, norms/biases f32)
# ---------------------------------------------------------------------------
def init_params(cfg, key):
    H, V, P, L = (cfg.hidden_size, cfg.vocab_size,
                  cfg.max_position_embeddings, cfg.num_layers)
    F = 4 * H
    std = 0.02
    k = jax.random.split(key, 6)

    def w(kk, shape):
        return (jax.random.normal(kk, shape, jnp.float32) * std).astype(jnp.bfloat16)

    return {
        "wte": jax.random.normal(k[0], (V, H), jnp.float32) * std,
        "wpe": jax.random.normal(k[1], (P, H), jnp.float32) * std,
        "lnfg": jnp.ones((1, H), jnp.float32),
        "lnfb": jnp.zeros((1, H), jnp.float32),
        "stack": {
            "ln1g": jnp.ones((L, 1, H), jnp.float32),
            "ln1b": jnp.zeros((L, 1, H), jnp.float32),
            "wqkv": w(k[2], (L, H, 3 * H)),
            "bqkv": jnp.zeros((L, 1, 3 * H), jnp.float32),
            "wo": w(k[3], (L, H, H)),
            "bo": jnp.zeros((L, 1, H), jnp.float32),
            "ln2g": jnp.ones((L, 1, H), jnp.float32),
            "ln2b": jnp.zeros((L, 1, H), jnp.float32),
            "wfc": w(k[4], (L, H, F)),
            "bfc": jnp.zeros((L, 1, F), jnp.float32),
            "wpj": w(k[5], (L, F, H)),
            "bpj": jnp.zeros((L, 1, H), jnp.float32),
        },
    }


# ---------------------------------------------------------------------------
# full forward (mirrors GPT2ForLanguageModeling.forward)
# ---------------------------------------------------------------------------
def gpt2_lm_forward(params, cfg, input_ids, attention_mask=None, labels=None):
    # truncation branch from the reference module
    if (not cfg.use_summary_attention
            and input_ids.shape[1] > cfg.max_position_embeddings):
        input_ids = input_ids[:, -cfg.max_position_embeddings:]
        if attention_mask is not None:
            attention_mask = attention_mask[:, -cfg.max_position_embeddings:]
        if labels is not None:
            labels = labels[:, -cfg.max_position_embeddings:]

    B, T = input_ids.shape
    H = cfg.hidden_size
    N = B * T

    # embedding lookup + position embedding (gather glue, plain JAX)
    x = jnp.take(params["wte"], input_ids, axis=0) + params["wpe"][:T][None]
    x = x.astype(jnp.float32).reshape(N, H)

    # combined additive attention bias (causal + key padding), built ONCE
    # TODO(synk): attention_mask only enters as an additive key-padding bias;
    # GPT2Model internals beyond the standard pre-LN GPT-2 stack are not given.
    if attention_mask is None:
        attention_mask = jnp.ones((B, T), jnp.float32)
    row = lax.broadcasted_iota(jnp.int32, (T, T), 0)
    col = lax.broadcasted_iota(jnp.int32, (T, T), 1)
    causal_bias = jnp.where(col <= row, 0.0, -1e9).astype(jnp.float32)   # (T,T)
    pad_bias = (1.0 - attention_mask.astype(jnp.float32)) * -1e9         # (B,T)
    attn_bias = causal_bias[None, :, :] + pad_bias[:, None, :]           # (B,T,T)

    hidden = run_gpt2_stack(x, attn_bias, params["stack"],
                            params["lnfg"], params["lnfb"],
                            B=B, T=T, num_heads=cfg.num_heads, eps=cfg.ln_eps)
    # hidden: (N, H) post final LayerNorm == transformer last_hidden_state

    # shifted labels flattened to (N,1); rows not in the shift window get -1
    # TODO(synk): matches torch CrossEntropyLoss(reduction='mean') assuming no
    # ignore_index(-100) labels are present (none are in the reference usage).
    if labels is not None:
        Lc = min(T, labels.shape[1])
        lab = jnp.full((B, T), -1, jnp.int32)
        lab = lab.at[:, :Lc - 1].set(labels[:, 1:Lc].astype(jnp.int32))
        n_valid = max(B * max(Lc - 1, 0), 1)
    else:
        lab = jnp.full((B, T), -1, jnp.int32)
        n_valid = 1
    lab_flat = lab.reshape(N, 1)

    logits_flat, nll = run_lm_head_ce(hidden, params["wte"], lab_flat)
    lm_logits = logits_flat.reshape(B, T, cfg.vocab_size)
    hidden_states = hidden.reshape(B, T, H)

    out_loss = None
    if labels is not None:
        if labels.shape[1] < T:          # mirror reference logits truncation
            lm_logits = lm_logits[:, :labels.shape[1]]
        out_loss = jnp.sum(nll) * (1.0 / float(n_valid))

    return {"loss": out_loss, "logits": lm_logits, "hidden_states": hidden_states}


# ---------------------------------------------------------------------------
# main
# ---------------------------------------------------------------------------
if __name__ == "__main__":
    cfg = Config()
    B, T = 2, 8

    key = jax.random.PRNGKey(0)
    pkey, ikey, lkey = jax.random.split(key, 3)
    params = init_params(cfg, pkey)

    input_ids = jax.random.randint(ikey, (B, T), 0, cfg.vocab_size, jnp.int32)
    labels = jax.random.randint(lkey, (B, T), 0, cfg.vocab_size, jnp.int32)
    attention_mask = jnp.ones((B, T), jnp.float32)

    out = gpt2_lm_forward(params, cfg, input_ids, attention_mask, labels)
    jax.block_until_ready(out["logits"])
    jax.block_until_ready(out["loss"])

    assert out["logits"].shape == (B, T, cfg.vocab_size)
    assert out["hidden_states"].shape == (B, T, cfg.hidden_size)
    assert bool(jnp.isfinite(out["loss"]))
    assert bool(jnp.all(jnp.isfinite(out["logits"])))
    print("KERNEL_OK")
</pallas_src>

<mosaic_0001>
module attributes {stable_mosaic.version = 11 : i64} {
  func.func @gpt2_stack_kernel(%arg0: i32, %arg1: memref<16x128xf32, #tpu.memory_space<vmem>>, %arg2: memref<2x8x8xf32, #tpu.memory_space<vmem>>, %arg3: memref<1x128xf32, #tpu.memory_space<vmem>>, %arg4: memref<1x128xf32, #tpu.memory_space<vmem>>, %arg5: memref<1x1x128xf32, #tpu.memory_space<vmem>>, %arg6: memref<1x1x128xf32, #tpu.memory_space<vmem>>, %arg7: memref<1x128x384xbf16, #tpu.memory_space<vmem>>, %arg8: memref<1x1x384xf32, #tpu.memory_space<vmem>>, %arg9: memref<1x128x128xbf16, #tpu.memory_space<vmem>>, %arg10: memref<1x1x128xf32, #tpu.memory_space<vmem>>, %arg11: memref<1x1x128xf32, #tpu.memory_space<vmem>>, %arg12: memref<1x1x128xf32, #tpu.memory_space<vmem>>, %arg13: memref<1x128x512xbf16, #tpu.memory_space<vmem>>, %arg14: memref<1x1x512xf32, #tpu.memory_space<vmem>>, %arg15: memref<1x512x128xbf16, #tpu.memory_space<vmem>>, %arg16: memref<1x1x128xf32, #tpu.memory_space<vmem>>, %arg17: memref<16x128xf32, #tpu.memory_space<vmem>>, %arg18: memref<16x128xf32, #tpu.memory_space<vmem>>) attributes {dimension_semantics = [#tpu.dimension_semantics<arbitrary>], iteration_bounds = array<i64: 2>, scalar_prefetch = 0 : i64, scratch_operands = 1 : i64, tpu.core_type = #tpu.core_type<tc>, window_params = [{pipeline_mode = #tpu.pipeline_mode<synchronous>, transform_indices = @transform_0, window_bounds = array<i64: 16, 128>}, {pipeline_mode = #tpu.pipeline_mode<synchronous>, transform_indices = @transform_1, window_bounds = array<i64: 2, 8, 8>}, {pipeline_mode = #tpu.pipeline_mode<synchronous>, transform_indices = @transform_2, window_bounds = array<i64: 1, 128>}, {pipeline_mode = #tpu.pipeline_mode<synchronous>, transform_indices = @transform_3, window_bounds = array<i64: 1, 128>}, {transform_indices = @transform_4, window_bounds = array<i64: 1, 1, 128>}, {transform_indices = @transform_5, window_bounds = array<i64: 1, 1, 128>}, {transform_indices = @transform_6, window_bounds = array<i64: 1, 128, 384>}, {transform_indices = @transform_7, window_bounds = array<i64: 1, 1, 384>}, {transform_indices = @transform_8, window_bounds = array<i64: 1, 128, 128>}, {transform_indices = @transform_9, window_bounds = array<i64: 1, 1, 128>}, {transform_indices = @transform_10, window_bounds = array<i64: 1, 1, 128>}, {transform_indices = @transform_11, window_bounds = array<i64: 1, 1, 128>}, {transform_indices = @transform_12, window_bounds = array<i64: 1, 128, 512>}, {transform_indices = @transform_13, window_bounds = array<i64: 1, 1, 512>}, {transform_indices = @transform_14, window_bounds = array<i64: 1, 512, 128>}, {transform_indices = @transform_15, window_bounds = array<i64: 1, 1, 128>}, {pipeline_mode = #tpu.pipeline_mode<synchronous>, transform_indices = @transform_16, window_bounds = array<i64: 16, 128>}]} {
    %c0_i32 = arith.constant 0 : i32
    %0 = arith.cmpi eq, %arg0, %c0_i32 : i32
    %1 = arith.extui %0 : i1 to i32
    %c0_i32_0 = arith.constant 0 : i32
    %2 = arith.cmpi ne, %1, %c0_i32_0 : i32
    scf.if %2 {
      %c0_70 = arith.constant 0 : index
      %c0_71 = arith.constant 0 : index
      %158 = vector.load %arg1[%c0_70, %c0_71] : memref<16x128xf32, #tpu.memory_space<vmem>>, vector<16x128xf32>
      %c0_72 = arith.constant 0 : index
      %c0_73 = arith.constant 0 : index
      %159 = vector.load %arg18[%c0_72, %c0_73] : memref<16x128xf32, #tpu.memory_space<vmem>>, vector<16x128xf32>
      tpu.vector_store %arg18[%c0_72, %c0_73], %158 {strides = array<i32>} : memref<16x128xf32, #tpu.memory_space<vmem>>, vector<16x128xf32>,
    } else {
    }
    %c0 = arith.constant 0 : index
    %c0_1 = arith.constant 0 : index
    %3 = vector.load %arg18[%c0, %c0_1] : memref<16x128xf32, #tpu.memory_space<vmem>>, vector<16x128xf32>
    %c0_2 = arith.constant 0 : index
    %c0_3 = arith.constant 0 : index
    %c0_4 = arith.constant 0 : index
    %4 = vector.load %arg5[%c0_2, %c0_3, %c0_4] : memref<1x1x128xf32, #tpu.memory_space<vmem>>, vector<1x1x128xf32>
    %5 = vector.shape_cast %4 : vector<1x1x128xf32> to vector<1x128xf32>
    %c0_5 = arith.constant 0 : index
    %c0_6 = arith.constant 0 : index
    %c0_7 = arith.constant 0 : index
    %6 = vector.load %arg6[%c0_5, %c0_6, %c0_7] : memref<1x1x128xf32, #tpu.memory_space<vmem>>, vector<1x1x128xf32>
    %7 = vector.shape_cast %6 : vector<1x1x128xf32> to vector<1x128xf32>
    %cst = arith.constant dense<0.000000e+00> : vector<16xf32>
    %8 = vector.multi_reduction <add>, %3, %cst [1] : vector<16x128xf32> to vector<16xf32>
    %9 = vector.shape_cast %8 : vector<16xf32> to vector<16x1xf32>
    %cst_8 = arith.constant 1.280000e+02 : f32
    %10 = vector.broadcast %cst_8 : f32 to vector<16x1xf32>
    %11 = arith.divf %9, %10 : vector<16x1xf32>
    %12 = vector.broadcast %11 : vector<16x1xf32> to vector<16x128xf32>
    %13 = arith.subf %3, %12 : vector<16x128xf32>
    %14 = arith.mulf %13, %13 : vector<16x128xf32>
    %cst_9 = arith.constant dense<0.000000e+00> : vector<16xf32>
    %15 = vector.multi_reduction <add>, %14, %cst_9 [1] : vector<16x128xf32> to vector<16xf32>
    %16 = vector.shape_cast %15 : vector<16xf32> to vector<16x1xf32>
    %cst_10 = arith.constant 1.280000e+02 : f32
    %17 = vector.broadcast %cst_10 : f32 to vector<16x1xf32>
    %18 = arith.divf %16, %17 : vector<16x1xf32>
    %19 = vector.broadcast %11 : vector<16x1xf32> to vector<16x128xf32>
    %20 = arith.subf %3, %19 : vector<16x128xf32>
    %cst_11 = arith.constant 9.99999974E-6 : f32
    %21 = vector.broadcast %cst_11 : f32 to vector<16x1xf32>
    %22 = arith.addf %18, %21 : vector<16x1xf32>
    %23 = math.rsqrt %22 : vector<16x1xf32>
    %24 = vector.broadcast %23 : vector<16x1xf32> to vector<16x128xf32>
    %25 = arith.mulf %20, %24 : vector<16x128xf32>
    %26 = vector.broadcast %5 : vector<1x128xf32> to vector<16x128xf32>
    %27 = arith.mulf %25, %26 : vector<16x128xf32>
    %28 = vector.broadcast %7 : vector<1x128xf32> to vector<16x128xf32>
    %29 = arith.addf %27, %28 : vector<16x128xf32>
    %30 = arith.truncf %29 : vector<16x128xf32> to vector<16x128xbf16>
    %c0_12 = arith.constant 0 : index
    %c0_13 = arith.constant 0 : index
    %c0_14 = arith.constant 0 : index
    %31 = vector.load %arg7[%c0_12, %c0_13, %c0_14] : memref<1x128x384xbf16, #tpu.memory_space<vmem>>, vector<1x128x384xbf16>
    %32 = vector.shape_cast %31 : vector<1x128x384xbf16> to vector<128x384xbf16>
    %cst_15 = arith.constant dense<0.000000e+00> : vector<16x384xf32>
    %33 = tpu.matmul %30, %32, %cst_15 {dimension_numbers = #tpu.dot_dimension_numbers<[1], [0], [0], [1], [0, 0, 1, 1], [], []>} : vector<16x128xbf16>, vector<128x384xbf16>, vector<16x384xf32> -> vector<16x384xf32>
    %c0_16 = arith.constant 0 : index
    %c0_17 = arith.constant 0 : index
    %c0_18 = arith.constant 0 : index
    %34 = vector.load %arg8[%c0_16, %c0_17, %c0_18] : memref<1x1x384xf32, #tpu.memory_space<vmem>>, vector<1x1x384xf32>
    %35 = vector.shape_cast %34 : vector<1x1x384xf32> to vector<1x384xf32>
    %36 = vector.broadcast %35 : vector<1x384xf32> to vector<16x384xf32>
    %37 = arith.addf %33, %36 : vector<16x384xf32>
    %38 = vector.extract_strided_slice %37 {offsets = [0, 0], sizes = [16, 128], strides = [1, 1]} : vector<16x384xf32> to vector<16x128xf32>
    %cst_19 = arith.constant 1.250000e-01 : f32
    %39 = vector.broadcast %cst_19 : f32 to vector<16x128xf32>
    %40 = arith.mulf %38, %39 : vector<16x128xf32>
    %41 = vector.shape_cast %40 : vector<16x128xf32> to vector<2x8x128xf32>
    %42 = vector.extract_strided_slice %37 {offsets = [0, 128], sizes = [16, 128], strides = [1, 1]} : vector<16x384xf32> to vector<16x128xf32>
    %43 = vector.shape_cast %42 : vector<16x128xf32> to vector<2x8x128xf32>
    %44 = vector.extract_strided_slice %37 {offsets = [0, 256], sizes = [16, 128], strides = [1, 1]} : vector<16x384xf32> to vector<16x128xf32>
    %45 = vector.shape_cast %44 : vector<16x128xf32> to vector<2x8x128xf32>
    %c0_20 = arith.constant 0 : index
    %c0_21 = arith.constant 0 : index
    %c0_22 = arith.constant 0 : index
    %46 = vector.load %arg2[%c0_20, %c0_21, %c0_22] : memref<2x8x8xf32, #tpu.memory_space<vmem>>, vector<2x8x8xf32>
    %47 = vector.extract_strided_slice %41 {offsets = [0, 0, 0], sizes = [2, 8, 64], strides = [1, 1, 1]} : vector<2x8x128xf32> to vector<2x8x64xf32>
    %48 = arith.truncf %47 : vector<2x8x64xf32> to vector<2x8x64xbf16>
    %49 = vector.extract_strided_slice %43 {offsets = [0, 0, 0], sizes = [2, 8, 64], strides = [1, 1, 1]} : vector<2x8x128xf32> to vector<2x8x64xf32>
    %50 = arith.truncf %49 : vector<2x8x64xf32> to vector<2x8x64xbf16>
    %51 = vector.extract_strided_slice %45 {offsets = [0, 0, 0], sizes = [2, 8, 64], strides = [1, 1, 1]} : vector<2x8x128xf32> to vector<2x8x64xf32>
    %52 = arith.truncf %51 : vector<2x8x64xf32> to vector<2x8x64xbf16>
    "tpu.trace_start"() <{level = 10 : i32, message = "btd,bsd->bts"}> : () -> ()
    %cst_23 = arith.constant dense<0.000000e+00> : vector<2x8x8xf32>
    %53 = tpu.matmul %48, %50, %cst_23 {dimension_numbers = #tpu.dot_dimension_numbers<[2], [2], [1], [1], [0, 0, 0, 1, 1, 1], [0], [0]>} : vector<2x8x64xbf16>, vector<2x8x64xbf16>, vector<2x8x8xf32> -> vector<2x8x8xf32>
    "tpu.trace_stop"() : () -> ()
    %54 = arith.addf %53, %46 : vector<2x8x8xf32>
    %cst_24 = arith.constant dense<0xFF800000> : vector<2x8xf32>
    %55 = vector.multi_reduction <maximumf>, %54, %cst_24 [2] : vector<2x8x8xf32> to vector<2x8xf32>
    %56 = vector.shape_cast %55 : vector<2x8xf32> to vector<2x8x1xf32>
    %57 = vector.broadcast %56 : vector<2x8x1xf32> to vector<2x8x8xf32>
    %58 = arith.subf %54, %57 : vector<2x8x8xf32>
    %59 = math.exp %58 : vector<2x8x8xf32>
    %cst_25 = arith.constant dense<0.000000e+00> : vector<2x8xf32>
    %60 = vector.multi_reduction <add>, %59, %cst_25 [2] : vector<2x8x8xf32> to vector<2x8xf32>
    %61 = vector.shape_cast %60 : vector<2x8xf32> to vector<2x8x1xf32>
    %62 = tpu.reciprocal %61 {approx = true} : vector<2x8x1xf32> -> vector<2x8x1xf32>
    %63 = vector.broadcast %62 : vector<2x8x1xf32> to vector<2x8x8xf32>
    %64 = arith.mulf %59, %63 : vector<2x8x8xf32>
    %65 = arith.truncf %64 : vector<2x8x8xf32> to vector<2x8x8xbf16>
    "tpu.trace_start"() <{level = 10 : i32, message = "bts,bsd->btd"}> : () -> ()
    %cst_26 = arith.constant dense<0.000000e+00> : vector<2x8x64xf32>
    %66 = tpu.matmul %65, %52, %cst_26 {dimension_numbers = #tpu.dot_dimension_numbers<[2], [1], [1], [2], [0, 0, 0, 1, 1, 2], [0], [0]>} : vector<2x8x8xbf16>, vector<2x8x64xbf16>, vector<2x8x64xf32> -> vector<2x8x64xf32>
    "tpu.trace_stop"() : () -> ()
    %67 = vector.extract_strided_slice %41 {offsets = [0, 0, 64], sizes = [2, 8, 64], strides = [1, 1, 1]} : vector<2x8x128xf32> to vector<2x8x64xf32>
    %68 = arith.truncf %67 : vector<2x8x64xf32> to vector<2x8x64xbf16>
    %69 = vector.extract_strided_slice %43 {offsets = [0, 0, 64], sizes = [2, 8, 64], strides = [1, 1, 1]} : vector<2x8x128xf32> to vector<2x8x64xf32>
    %70 = arith.truncf %69 : vector<2x8x64xf32> to vector<2x8x64xbf16>
    %71 = vector.extract_strided_slice %45 {offsets = [0, 0, 64], sizes = [2, 8, 64], strides = [1, 1, 1]} : vector<2x8x128xf32> to vector<2x8x64xf32>
    %72 = arith.truncf %71 : vector<2x8x64xf32> to vector<2x8x64xbf16>
    "tpu.trace_start"() <{level = 10 : i32, message = "btd,bsd->bts"}> : () -> ()
    %cst_27 = arith.constant dense<0.000000e+00> : vector<2x8x8xf32>
    %73 = tpu.matmul %68, %70, %cst_27 {dimension_numbers = #tpu.dot_dimension_numbers<[2], [2], [1], [1], [0, 0, 0, 1, 1, 1], [0], [0]>} : vector<2x8x64xbf16>, vector<2x8x64xbf16>, vector<2x8x8xf32> -> vector<2x8x8xf32>
    "tpu.trace_stop"() : () -> ()
    %74 = arith.addf %73, %46 : vector<2x8x8xf32>
    %cst_28 = arith.constant dense<0xFF800000> : vector<2x8xf32>
    %75 = vector.multi_reduction <maximumf>, %74, %cst_28 [2] : vector<2x8x8xf32> to vector<2x8xf32>
    %76 = vector.shape_cast %75 : vector<2x8xf32> to vector<2x8x1xf32>
    %77 = vector.broadcast %76 : vector<2x8x1xf32> to vector<2x8x8xf32>
    %78 = arith.subf %74, %77 : vector<2x8x8xf32>
    %79 = math.exp %78 : vector<2x8x8xf32>
    %cst_29 = arith.constant dense<0.000000e+00> : vector<2x8xf32>
    %80 = vector.multi_reduction <add>, %79, %cst_29 [2] : vector<2x8x8xf32> to vector<2x8xf32>
    %81 = vector.shape_cast %80 : vector<2x8xf32> to vector<2x8x1xf32>
    %82 = tpu.reciprocal %81 {approx = true} : vector<2x8x1xf32> -> vector<2x8x1xf32>
    %83 = vector.broadcast %82 : vector<2x8x1xf32> to vector<2x8x8xf32>
    %84 = arith.mulf %79, %83 : vector<2x8x8xf32>
    %85 = arith.truncf %84 : vector<2x8x8xf32> to vector<2x8x8xbf16>
    "tpu.trace_start"() <{level = 10 : i32, message = "bts,bsd->btd"}> : () -> ()
    %cst_30 = arith.constant dense<0.000000e+00> : vector<2x8x64xf32>
    %86 = tpu.matmul %85, %72, %cst_30 {dimension_numbers = #tpu.dot_dimension_numbers<[2], [1], [1], [2], [0, 0, 0, 1, 1, 2], [0], [0]>} : vector<2x8x8xbf16>, vector<2x8x64xbf16>, vector<2x8x64xf32> -> vector<2x8x64xf32>
    "tpu.trace_stop"() : () -> ()
    %87 = tpu.concatenate %66, %86 in 2 : vector<2x8x64xf32>, vector<2x8x64xf32> -> vector<2x8x128xf32>
    %88 = vector.shape_cast %87 : vector<2x8x128xf32> to vector<16x128xf32>
    %89 = arith.truncf %88 : vector<16x128xf32> to vector<16x128xbf16>
    %c0_31 = arith.constant 0 : index
    %c0_32 = arith.constant 0 : index
    %c0_33 = arith.constant 0 : index
    %90 = vector.load %arg9[%c0_31, %c0_32, %c0_33] : memref<1x128x128xbf16, #tpu.memory_space<vmem>>, vector<1x128x128xbf16>
    %91 = vector.shape_cast %90 : vector<1x128x128xbf16> to vector<128x128xbf16>
    %cst_34 = arith.constant dense<0.000000e+00> : vector<16x128xf32>
    %92 = tpu.matmul %89, %91, %cst_34 {dimension_numbers = #tpu.dot_dimension_numbers<[1], [0], [0], [1], [0, 0, 1, 1], [], []>} : vector<16x128xbf16>, vector<128x128xbf16>, vector<16x128xf32> -> vector<16x128xf32>
    %c0_35 = arith.constant 0 : index
    %c0_36 = arith.constant 0 : index
    %c0_37 = arith.constant 0 : index
    %93 = vector.load %arg10[%c0_35, %c0_36, %c0_37] : memref<1x1x128xf32, #tpu.memory_space<vmem>>, vector<1x1x128xf32>
    %94 = vector.shape_cast %93 : vector<1x1x128xf32> to vector<1x128xf32>
    %95 = vector.broadcast %94 : vector<1x128xf32> to vector<16x128xf32>
    %96 = arith.addf %92, %95 : vector<16x128xf32>
    %97 = arith.addf %3, %96 : vector<16x128xf32>
    %c0_38 = arith.constant 0 : index
    %c0_39 = arith.constant 0 : index
    %c0_40 = arith.constant 0 : index
    %98 = vector.load %arg11[%c0_38, %c0_39, %c0_40] : memref<1x1x128xf32, #tpu.memory_space<vmem>>, vector<1x1x128xf32>
    %99 = vector.shape_cast %98 : vector<1x1x128xf32> to vector<1x128xf32>
    %c0_41 = arith.constant 0 : index
    %c0_42 = arith.constant 0 : index
    %c0_43 = arith.constant 0 : index
    %100 = vector.load %arg12[%c0_41, %c0_42, %c0_43] : memref<1x1x128xf32, #tpu.memory_space<vmem>>, vector<1x1x128xf32>
    %101 = vector.shape_cast %100 : vector<1x1x128xf32> to vector<1x128xf32>
    %cst_44 = arith.constant dense<0.000000e+00> : vector<16xf32>
    %102 = vector.multi_reduction <add>, %97, %cst_44 [1] : vector<16x128xf32> to vector<16xf32>
    %103 = vector.shape_cast %102 : vector<16xf32> to vector<16x1xf32>
    %cst_45 = arith.constant 1.280000e+02 : f32
    %104 = vector.broadcast %cst_45 : f32 to vector<16x1xf32>
    %105 = arith.divf %103, %104 : vector<16x1xf32>
    %106 = vector.broadcast %105 : vector<16x1xf32> to vector<16x128xf32>
    %107 = arith.subf %97, %106 : vector<16x128xf32>
    %108 = arith.mulf %107, %107 : vector<16x128xf32>
    %cst_46 = arith.constant dense<0.000000e+00> : vector<16xf32>
    %109 = vector.multi_reduction <add>, %108, %cst_46 [1] : vector<16x128xf32> to vector<16xf32>
    %110 = vector.shape_cast %109 : vector<16xf32> to vector<16x1xf32>
    %cst_47 = arith.constant 1.280000e+02 : f32
    %111 = vector.broadcast %cst_47 : f32 to vector<16x1xf32>
    %112 = arith.divf %110, %111 : vector<16x1xf32>
    %113 = vector.broadcast %105 : vector<16x1xf32> to vector<16x128xf32>
    %114 = arith.subf %97, %113 : vector<16x128xf32>
    %cst_48 = arith.constant 9.99999974E-6 : f32
    %115 = vector.broadcast %cst_48 : f32 to vector<16x1xf32>
    %116 = arith.addf %112, %115 : vector<16x1xf32>
    %117 = math.rsqrt %116 : vector<16x1xf32>
    %118 = vector.broadcast %117 : vector<16x1xf32> to vector<16x128xf32>
    %119 = arith.mulf %114, %118 : vector<16x128xf32>
    %120 = vector.broadcast %99 : vector<1x128xf32> to vector<16x128xf32>
    %121 = arith.mulf %119, %120 : vector<16x128xf32>
    %122 = vector.broadcast %101 : vector<1x128xf32> to vector<16x128xf32>
    %123 = arith.addf %121, %122 : vector<16x128xf32>
    %124 = arith.truncf %123 : vector<16x128xf32> to vector<16x128xbf16>
    %c0_49 = arith.constant 0 : index
    %c0_50 = arith.constant 0 : index
    %c0_51 = arith.constant 0 : index
    %125 = vector.load %arg13[%c0_49, %c0_50, %c0_51] : memref<1x128x512xbf16, #tpu.memory_space<vmem>>, vector<1x128x512xbf16>
    %126 = vector.shape_cast %125 : vector<1x128x512xbf16> to vector<128x512xbf16>
    %cst_52 = arith.constant dense<0.000000e+00> : vector<16x512xf32>
    %127 = tpu.matmul %124, %126, %cst_52 {dimension_numbers = #tpu.dot_dimension_numbers<[1], [0], [0], [1], [0, 0, 1, 1], [], []>} : vector<16x128xbf16>, vector<128x512xbf16>, vector<16x512xf32> -> vector<16x512xf32>
    %c0_53 = arith.constant 0 : index
    %c0_54 = arith.constant 0 : index
    %c0_55 = arith.constant 0 : index
    %128 = vector.load %arg14[%c0_53, %c0_54, %c0_55] : memref<1x1x512xf32, #tpu.memory_space<vmem>>, vector<1x1x512xf32>
    %129 = vector.shape_cast %128 : vector<1x1x512xf32> to vector<1x512xf32>
    %130 = vector.broadcast %129 : vector<1x512xf32> to vector<16x512xf32>
    %131 = arith.addf %127, %130 : vector<16x512xf32>
    %132 = arith.mulf %131, %131 : vector<16x512xf32>
    %133 = arith.mulf %131, %132 : vector<16x512xf32>
    %cst_56 = arith.constant 4.471500e-02 : f32
    %134 = vector.broadcast %cst_56 : f32 to vector<16x512xf32>
    %135 = arith.mulf %134, %133 : vector<16x512xf32>
    %136 = arith.addf %131, %135 : vector<16x512xf32>
    %cst_57 = arith.constant 0.797884583 : f32
    %137 = vector.broadcast %cst_57 : f32 to vector<16x512xf32>
    %138 = arith.mulf %137, %136 : vector<16x512xf32>
    %139 = math.tanh %138 : vector<16x512xf32>
    %cst_58 = arith.constant 1.000000e+00 : f32
    %140 = vector.broadcast %cst_58 : f32 to vector<16x512xf32>
    %141 = arith.addf %140, %139 : vector<16x512xf32>
    %cst_59 = arith.constant 5.000000e-01 : f32
    %142 = vector.broadcast %cst_59 : f32 to vector<16x512xf32>
    %143 = arith.mulf %142, %141 : vector<16x512xf32>
    %144 = arith.mulf %131, %143 : vector<16x512xf32>
    %145 = arith.truncf %144 : vector<16x512xf32> to vector<16x512xbf16>
    %c0_60 = arith.constant 0 : index
    %c0_61 = arith.constant 0 : index
    %c0_62 = arith.constant 0 : index
    %146 = vector.load %arg15[%c0_60, %c0_61, %c0_62] : memref<1x512x128xbf16, #tpu.memory_space<vmem>>, vector<1x512x128xbf16>
    %147 = vector.shape_cast %146 : vector<1x512x128xbf16> to vector<512x128xbf16>
    %cst_63 = arith.constant dense<0.000000e+00> : vector<16x128xf32>
    %148 = tpu.matmul %145, %147, %cst_63 {dimension_numbers = #tpu.dot_dimension_numbers<[1], [0], [0], [1], [0, 0, 1, 1], [], []>} : vector<16x512xbf16>, vector<512x128xbf16>, vector<16x128xf32> -> vector<16x128xf32>
    %c0_64 = arith.constant 0 : index
    %c0_65 = arith.constant 0 : index
    %c0_66 = arith.constant 0 : index
    %149 = vector.load %arg16[%c0_64, %c0_65, %c0_66] : memref<1x1x128xf32, #tpu.memory_space<vmem>>, vector<1x1x128xf32>
    %150 = vector.shape_cast %149 : vector<1x1x128xf32> to vector<1x128xf32>
    %151 = vector.broadcast %150 : vector<1x128xf32> to vector<16x128xf32>
    %152 = arith.addf %148, %151 : vector<16x128xf32>
    %153 = arith.addf %97, %152 : vector<16x128xf32>
    %c0_67 = arith.constant 0 : index
    %c0_68 = arith.constant 0 : index
    %154 = vector.load %arg18[%c0_67, %c0_68] : memref<16x128xf32, #tpu.memory_space<vmem>>, vector<16x128xf32>
    tpu.vector_store %arg18[%c0_67, %c0_68], %153 {strides = array<i32>} : memref<16x128xf32, #tpu.memory_space<vmem>>, vector<16x128xf32>,
    %c1_i32 = arith.constant 1 : i32
    %155 = arith.cmpi eq, %arg0, %c1_i32 : i32
    %156 = arith.extui %155 : i1 to i32
    %c0_i32_69 = arith.constant 0 : i32
    %157 = arith.cmpi ne, %156, %c0_i32_69 : i32
    scf.if %157 {
      %c0_70 = arith.constant 0 : index
      %c0_71 = arith.constant 0 : index
      %158 = vector.load %arg3[%c0_70, %c0_71] : memref<1x128xf32, #tpu.memory_space<vmem>>, vector<1x128xf32>
      %c0_72 = arith.constant 0 : index
      %c0_73 = arith.constant 0 : index
      %159 = vector.load %arg4[%c0_72, %c0_73] : memref<1x128xf32, #tpu.memory_space<vmem>>, vector<1x128xf32>
      %cst_74 = arith.constant dense<0.000000e+00> : vector<16xf32>
      %160 = vector.multi_reduction <add>, %153, %cst_74 [1] : vector<16x128xf32> to vector<16xf32>
      %161 = vector.shape_cast %160 : vector<16xf32> to vector<16x1xf32>
      %cst_75 = arith.constant 1.280000e+02 : f32
      %162 = vector.broadcast %cst_75 : f32 to vector<16x1xf32>
      %163 = arith.divf %161, %162 : vector<16x1xf32>
      %164 = vector.broadcast %163 : vector<16x1xf32> to vector<16x128xf32>
      %165 = arith.subf %153, %164 : vector<16x128xf32>
      %166 = arith.mulf %165, %165 : vector<16x128xf32>
      %cst_76 = arith.constant dense<0.000000e+00> : vector<16xf32>
      %167 = vector.multi_reduction <add>, %166, %cst_76 [1] : vector<16x128xf32> to vector<16xf32>
      %168 = vector.shape_cast %167 : vector<16xf32> to vector<16x1xf32>
      %cst_77 = arith.constant 1.280000e+02 : f32
      %169 = vector.broadcast %cst_77 : f32 to vector<16x1xf32>
      %170 = arith.divf %168, %169 : vector<16x1xf32>
      %171 = vector.broadcast %163 : vector<16x1xf32> to vector<16x128xf32>
      %172 = arith.subf %153, %171 : vector<16x128xf32>
      %cst_78 = arith.constant 9.99999974E-6 : f32
      %173 = vector.broadcast %cst_78 : f32 to vector<16x1xf32>
      %174 = arith.addf %170, %173 : vector<16x1xf32>
      %175 = math.rsqrt %174 : vector<16x1xf32>
      %176 = vector.broadcast %175 : vector<16x1xf32> to vector<16x128xf32>
      %177 = arith.mulf %172, %176 : vector<16x128xf32>
      %178 = vector.broadcast %158 : vector<1x128xf32> to vector<16x128xf32>
      %179 = arith.mulf %177, %178 : vector<16x128xf32>
      %180 = vector.broadcast %159 : vector<1x128xf32> to vector<16x128xf32>
      %181 = arith.addf %179, %180 : vector<16x128xf32>
      %c0_79 = arith.constant 0 : index
      %c0_80 = arith.constant 0 : index
      %182 = vector.load %arg17[%c0_79, %c0_80] : memref<16x128xf32, #tpu.memory_space<vmem>>, vector<16x128xf32>
      tpu.vector_store %arg17[%c0_79, %c0_80], %181 {strides = array<i32>} : memref<16x128xf32, #tpu.memory_space<vmem>>, vector<16x128xf32>,
    } else {
    }
    return
  }
  func.func @transform_0(%arg0: i32) -> (i32, i32) {
    %c0_i32 = arith.constant 0 : i32
    %c0_i32_0 = arith.constant 0 : i32
    %c0_i32_1 = arith.constant 0 : i32
    return %c0_i32, %c0_i32_0 : i32, i32
  }
  func.func @transform_1(%arg0: i32) -> (i32, i32, i32) {
    %c0_i32 = arith.constant 0 : i32
    %c0_i32_0 = arith.constant 0 : i32
    %c0_i32_1 = arith.constant 0 : i32
    %c0_i32_2 = arith.constant 0 : i32
    return %c0_i32, %c0_i32_0, %c0_i32_1 : i32, i32, i32
  }
  func.func @transform_2(%arg0: i32) -> (i32, i32) {
    %c0_i32 = arith.constant 0 : i32
    %c0_i32_0 = arith.constant 0 : i32
    %c0_i32_1 = arith.constant 0 : i32
    return %c0_i32, %c0_i32_0 : i32, i32
  }
  func.func @transform_3(%arg0: i32) -> (i32, i32) {
    %c0_i32 = arith.constant 0 : i32
    %c0_i32_0 = arith.constant 0 : i32
    %c0_i32_1 = arith.constant 0 : i32
    return %c0_i32, %c0_i32_0 : i32, i32
  }
  func.func @transform_4(%arg0: i32) -> (i32, i32, i32) {
    %c0_i32 = arith.constant 0 : i32
    %c0_i32_0 = arith.constant 0 : i32
    %c0_i32_1 = arith.constant 0 : i32
    return %arg0, %c0_i32, %c0_i32_0 : i32, i32, i32
  }
  func.func @transform_5(%arg0: i32) -> (i32, i32, i32) {
    %c0_i32 = arith.constant 0 : i32
    %c0_i32_0 = arith.constant 0 : i32
    %c0_i32_1 = arith.constant 0 : i32
    return %arg0, %c0_i32, %c0_i32_0 : i32, i32, i32
  }
  func.func @transform_6(%arg0: i32) -> (i32, i32, i32) {
    %c0_i32 = arith.constant 0 : i32
    %c0_i32_0 = arith.constant 0 : i32
    %c0_i32_1 = arith.constant 0 : i32
    return %arg0, %c0_i32, %c0_i32_0 : i32, i32, i32
  }
  func.func @transform_7(%arg0: i32) -> (i32, i32, i32) {
    %c0_i32 = arith.constant 0 : i32
    %c0_i32_0 = arith.constant 0 : i32
    %c0_i32_1 = arith.constant 0 : i32
    return %arg0, %c0_i32, %c0_i32_0 : i32, i32, i32
  }
  func.func @transform_8(%arg0: i32) -> (i32, i32, i32) {
    %c0_i32 = arith.constant 0 : i32
    %c0_i32_0 = arith.constant 0 : i32
    %c0_i32_1 = arith.constant 0 : i32
    return %arg0, %c0_i32, %c0_i32_0 : i32, i32, i32
  }
  func.func @transform_9(%arg0: i32) -> (i32, i32, i32) {
    %c0_i32 = arith.constant 0 : i32
    %c0_i32_0 = arith.constant 0 : i32
    %c0_i32_1 = arith.constant 0 : i32
    return %arg0, %c0_i32, %c0_i32_0 : i32, i32, i32
  }
  func.func @transform_10(%arg0: i32) -> (i32, i32, i32) {
    %c0_i32 = arith.constant 0 : i32
    %c0_i32_0 = arith.constant 0 : i32
    %c0_i32_1 = arith.constant 0 : i32
    return %arg0, %c0_i32, %c0_i32_0 : i32, i32, i32
  }
  func.func @transform_11(%arg0: i32) -> (i32, i32, i32) {
    %c0_i32 = arith.constant 0 : i32
    %c0_i32_0 = arith.constant 0 : i32
    %c0_i32_1 = arith.constant 0 : i32
    return %arg0, %c0_i32, %c0_i32_0 : i32, i32, i32
  }
  func.func @transform_12(%arg0: i32) -> (i32, i32, i32) {
    %c0_i32 = arith.constant 0 : i32
    %c0_i32_0 = arith.constant 0 : i32
    %c0_i32_1 = arith.constant 0 : i32
    return %arg0, %c0_i32, %c0_i32_0 : i32, i32, i32
  }
  func.func @transform_13(%arg0: i32) -> (i32, i32, i32) {
    %c0_i32 = arith.constant 0 : i32
    %c0_i32_0 = arith.constant 0 : i32
    %c0_i32_1 = arith.constant 0 : i32
    return %arg0, %c0_i32, %c0_i32_0 : i32, i32, i32
  }
  func.func @transform_14(%arg0: i32) -> (i32, i32, i32) {
    %c0_i32 = arith.constant 0 : i32
    %c0_i32_0 = arith.constant 0 : i32
    %c0_i32_1 = arith.constant 0 : i32
    return %arg0, %c0_i32, %c0_i32_0 : i32, i32, i32
  }
  func.func @transform_15(%arg0: i32) -> (i32, i32, i32) {
    %c0_i32 = arith.constant 0 : i32
    %c0_i32_0 = arith.constant 0 : i32
    %c0_i32_1 = arith.constant 0 : i32
    return %arg0, %c0_i32, %c0_i32_0 : i32, i32, i32
  }
  func.func @transform_16(%arg0: i32) -> (i32, i32) {
    %c0_i32 = arith.constant 0 : i32
    %c0_i32_0 = arith.constant 0 : i32
    %c0_i32_1 = arith.constant 0 : i32
    return %c0_i32, %c0_i32_0 : i32, i32
  }
}

</mosaic_0001>

<bundles_post_ra>
// kernel: tpu_custom_call.1
= control target key start
LH: loop header
LB: loop body
LE: loop exit
PB: predicated region body
PF: predicated region fallthrough
CT: control target
= control target key end

     0   :  { %s4612_s0 = inlined_call_operand.hbm [shape: f32[16,128], index: 0, kind: input, shape index: {}]   ;;  %s4613_s1 = inlined_call_operand.hbm [shape: f32[2,8,8], index: 1, kind: input, shape index: {}]   ;;  %s4614_s2 = inlined_call_operand.hbm [shape: f32[1,128], index: 2, kind: input, shape index: {}]   ;;  %s4615_s3 = inlined_call_operand.hbm [shape: f32[1,128], index: 3, kind: input, shape index: {}]   ;;  %s4616_s4 = inlined_call_operand.hbm [shape: f32[2,1,128], index: 4, kind: input, shape index: {}]   ;;  %s4617_s5 = inlined_call_operand.vmem [shape: f32[2,1,128], index: 5, kind: input, shape index: {}]   ;;  %s4618_s6 = inlined_call_operand.hbm [shape: bf16[2,128,384], index: 6, kind: input, shape index: {}]   ;;  %s4619_s7 = inlined_call_operand.vmem [shape: f32[2,1,384], index: 7, kind: input, shape index: {}]   ;;  %s4620_s8 = inlined_call_operand.hbm [shape: bf16[2,128,128], index: 8, kind: input, shape index: {}]   ;;  %s4621_s9 = inlined_call_operand.vmem [shape: f32[2,1,128], index: 9, kind: input, shape index: {}]   ;;  %s4622_s10 = inlined_call_operand.vmem [shape: f32[2,1,128], index: 10, kind: input, shape index: {}]   ;;  %s4623_s11 = inlined_call_operand.vmem [shape: f32[2,1,128], index: 11, kind: input, shape index: {}]   ;;  %s4624_s12 = inlined_call_operand.hbm [shape: bf16[2,128,512], index: 12, kind: input, shape index: {}]   ;;  %s4625_s13 = inlined_call_operand.vmem [shape: f32[2,1,512], index: 13, kind: input, shape index: {}]   ;;  %s4626_s14 = inlined_call_operand.hbm [shape: bf16[2,512,128], index: 14, kind: input, shape index: {}]   ;;  %s4627_s15 = inlined_call_operand.vmem [shape: f32[2,1,128], index: 15, kind: input, shape index: {}]   ;;  %s4628_s16 = inlined_call_operand.hbm [shape: f32[16,128], index: 16, kind: output, shape index: {}]  }
   0x1   :  { %4649 = sst [smem:[#allocation24_spill]] %s4612_s0 }
   0x2   :  { %4650 = sst [smem:[#allocation25_spill]] %s4613_s1 }
   0x3   :  { %4651 = sst [smem:[#allocation26_spill]] %s4614_s2 }
   0x4   :  { %4652 = sst [smem:[#allocation27_spill]] %s4615_s3 }
   0x5   :  { %4653 = sst [smem:[#allocation28_spill]] %s4616_s4 }
   0x6   :  { %4654 = sst [smem:[#allocation29_spill]] %s4617_s5 }
   0x7   :  { %4655 = sst [smem:[#allocation30_spill]] %s4618_s6 }
   0x8   :  { %4656 = sst [smem:[#allocation31_spill]] %s4619_s7 }
   0x9   :  { %4657 = sst [smem:[#allocation32_spill]] %s4620_s8 }
   0xa   :  { %4658 = sst [smem:[#allocation33_spill]] %s4621_s9 }
   0xb   :  { %4659 = sst [smem:[#allocation34_spill]] %s4622_s10 }
   0xc   :  { %4660 = sst [smem:[#allocation35_spill]] %s4623_s11 }
   0xd   :  { %4661 = sst [smem:[#allocation36_spill]] %s4624_s12 }
   0xe   :  { %4662 = sst [smem:[#allocation37_spill]] %s4625_s13 }
   0xf   :  { %4663 = sst [smem:[#allocation38_spill]] %s4627_s15 }
  0x10   :  { %4664 = sst [smem:[#allocation39_spill]] %s4628_s16 }
  0x11   :  { %21 = vsyncpa [#allocation4], 0 }
  0x12   :  { %22 = vsyncpa [#allocation7], 0 }
  0x13   :  { %23 = vsyncpa [#allocation10], 0 }
  0x14   :  { %24 = vsyncpa [#allocation5], 0  ;;  %s3824_s21 = smov 0   ;;  %s3826_s22 = smov 0  }
  0x15   :  { %s3828_s23 = smov 0   ;;  %s3830_s24 = smov 0  }
  0x16 LB: > { %s3843_s25 = sadd.s32 4294967295, %s3713_s24   ;;  %p134_p0 = scmp.ne.s32.totalorder %s3705_s22, %s3701_s21  ;;  %s3713_s24 = sphi %s3830_s24, %s4719_s24   ;;  %s3709_s23 = sphi %s3828_s23, %s4723_s23   ;;  %s3705_s22 = sphi %s3826_s22, %s4722_s22   ;;  %s3701_s21 = sphi %s3824_s21, %s4721_s21  }
  0x17   : > { %p4631_p1 = scmp.eq.s32.totalorder %s3843_s25, 0  ;;  %p2768_p2 = scmp.ge.s32.totalorder %s3713_s24, 1 }
  0x18   : > { %p452_p3 = scmp.lt.s32.totalorder %s3713_s24, 3  ;;  %s3715_s28 = smov [#allocation3]  }
  0x19   : > { %p3852_p5 = por %p4631_p1, %p134_p0  ;;  %s464_s29 = sshll.u32 %s3715_s28, 4  ;;  %s465_s29 = int_to_ptr.vmem [resolvable:$true] %s464_s29 }
  0x1a   : > { %p3856_p6 = pnand %p2768_p2, %p452_p3  ;;  %s3869_s0 = sadd.s32 1, %s3713_s24  }
  0x1b   : > { %s4665_s26 = scalar_select %p3852_p5, 1, 0 }
  0x1c   : > { %s4666_s27 = scalar_select %p3856_p6, 1, 0 }
  0x1d   : > { %p3115_p7 = pneg %p3856_p6  ;;  %4668 = sst [smem:[#allocation22_spill]] %s3869_s0 }
  0x1e   : > { %s121_s17 = sadd.s32 1, %s3709_s23  ;;  %s118_s18 = ssub.s32 %s3713_s24, %s3869_s0 }
  0x1f   : > { %p3864_p8 = pnand %p3115_p7, %p4631_p1  ;;  %s4669_s21 = sld [smem:[#allocation24_spill]] }
  0x21   : > { %s4667_s30 = scalar_select %p3864_p8, 1, 0 }
  0x22   : > { %p3882_p10 = pneg %p3864_p8 }
  0x24   : > { %s4671_s11 = scalar_select %p3882_p10, 1, 0 }
  0x25   : > { %s4670_s16 = smov %s4669_s21  ;;  %s3375_s13 = scalar_lea.hbm %s4669_s21, 256 }
  0x26   : > { %p3376_p9 = scmp.ne.s32.totalorder %s4670_s16, %s3375_s13  ;;  %p3382_p13 = scmp.lt.u32.totalorder %s3375_s13, %s4670_s16 }
  0x28   : > { %p3378_p11 = pnand %p3882_p10, %p3376_p9 }
  0x2a   : > { %p3379_p12 = pneg %p3378_p11 }
  0x2c   : > { %p3384_p0 = pnand %p3382_p13, %p3379_p12 }
  0x2e   : > { %3387 = shalt.err (!%p3384_p0)
}
  0x2f   : > { %s3388_s19 = scalar_lea.vmem %s465_s29, 256  ;;  %p3396_p4 = scmp.lt.s32.totalorder %s465_s29, %s465_s29 }
  0x30   : > { %p3389_p2 = scmp.ne.s32.totalorder %s465_s29, %s3388_s19  ;;  %p3397_p1 = scmp.lt.s32.totalorder %s3388_s19, %s3388_s19 }
  0x32   : > { %p3391_p3 = pnand %p3389_p2, %p3882_p10  ;;  %p3398_p5 = por %p3397_p1, %p3396_p4 }
  0x34   : > { %p3392_p7 = pneg %p3391_p3 }
  0x36   : > { %p3399_p6 = pnand %p3398_p5, %p3392_p7 }
  0x38   : > { %3402 = shalt.err (!%p3399_p6)
}
  0x39   : > { %s4636_s15 = smov 128   ;;  %s4637_s7 = smov 8  }
  0x3a   : > { %3118 = dma.hbm_to_vmem [thread:$0]  (!%p3864_p8), %s4670_s16, 256, %s465_s29, [#allocation4], %s4636_s15, %s4636_s15, %s4637_s7  }
  0x3b   : > { %p119_p1 = scmp.eq.s32.totalorder %s118_s18, 0  ;;  %p128_p4 = scmp.ne.s32.totalorder %s3709_s23, %s3705_s22 }
  0x3c   : > { %p129_p5 = scmp.eq.s32.totalorder %s3713_s24, 0  ;;  %p3148_p6 = scmp.lt.s32.totalorder %s3713_s24, 2 }
  0x3d   : > { %s3906_s20 = scalar_select %p119_p1, %s3709_s23, %s121_s17  }
  0x3e   : > { %p130_p9 = por %p129_p5, %p128_p4  ;;  %s513_s21 = sand.u32 1, %s3713_s24  }
  0x3f   : > { %4672 = sst [smem:[#allocation23_spill]] %s3906_s20  ;;  %s3910_s28 = sand.u32 1, %s3709_s23  }
  0x40   : > { %s2774_s19 = sshll.u32 %s3713_s24, 4  ;;  %s4673_s4 = sld [smem:[#allocation28_spill]] }
  0x41   : > { %s516_s29 = scalar_lea.vmem [#allocation11], %s3910_s28  ;;  %p3921_p11 = pnand %p3148_p6, %p130_p9 }
  0x42   : > { %s523_s18 = sshll.u32 %s516_s29, 4  ;;  %s3082_s13 = smul.u32 3072, %s3713_s24  ;;  %s3919_s18 = int_to_ptr.vmem [resolvable:$true] %s523_s18 }
  0x43   : > { %s4674_s17 = scalar_select %p3921_p11, 1, 0 }
  0x44   : > { %s3927_s15 = scalar_lea.sflag [#allocation4], %s513_s21  ;;  %p3933_p13 = pneg %p3921_p11 }
  0x46   : > { %s3916_s5 = scalar_lea.hbm %s4673_s4, %s2774_s19  ;;  %s3408_s7 = scalar_lea.hbm %s4673_s4, 32 }
  0x47   : > { %s3403_s9 = scalar_lea.hbm %s3916_s5, 16  ;;  %p3409_p3 = scmp.lt.u32.totalorder %s3916_s5, %s4673_s4 }
  0x48   : > { %p3404_p12 = scmp.ne.s32.totalorder %s3916_s5, %s3403_s9  ;;  %p3410_p7 = scmp.lt.u32.totalorder %s3408_s7, %s3403_s9 }
  0x49   : > { %p3412_p4 = scmp.lt.u32.totalorder %s3403_s9, %s3916_s5 }
  0x4a   : > { %p3406_p0 = pnand %p3933_p13, %p3404_p12  ;;  %p3411_p1 = por %p3410_p7, %p3409_p3 }
  0x4c   : > { %p3407_p2 = pneg %p3406_p0  ;;  %p3413_p5 = por %p3412_p4, %p3411_p1 }
  0x4e   : > { %p3414_p6 = pnand %p3413_p5, %p3407_p2 }
  0x50   : > { %3417 = shalt.err (!%p3414_p6)
}
  0x51   : > { %s3418_s21 = scalar_lea.vmem %s3919_s18, 16  ;;  %s3718_s19 = smov [#allocation11]  }
  0x52   : > { %p3419_p9 = scmp.ne.s32.totalorder %s3919_s18, %s3418_s21  ;;  %s3423_s29 = sshll.u32 %s3718_s19, 4  ;;  %s3424_s29 = int_to_ptr.vmem [resolvable:$false] %s3423_s29 }
  0x53   : > { %s3425_s16 = scalar_lea.vmem %s3424_s29, 32  ;;  %p3426_p8 = scmp.lt.s32.totalorder %s3919_s18, %s3424_s29 }
  0x54   : > { %p3421_p12 = pnand %p3419_p9, %p3933_p13  ;;  %p3427_p10 = scmp.lt.s32.totalorder %s3425_s16, %s3418_s21 }
  0x56   : > { %p3422_p0 = pneg %p3421_p12  ;;  %p3428_p3 = por %p3427_p10, %p3426_p8 }
  0x58   : > { %p3429_p7 = pnand %p3428_p3, %p3422_p0 }
  0x5a   : > { %3432 = shalt.err (!%p3429_p7)
}
  0x5b   : > { %3131 = dma.hbm_to_vmem [thread:$0]  (!%p3921_p11), %s3916_s5, 16, %s3919_s18, %s3927_s15  }
  0x5c   : > { %s4676_s6 = sld [smem:[#allocation30_spill]]  ;;  %s4677_s21 = smul.u32 192, %s3910_s28 }
  0x5d   : > { %s2776_s16 = sshll.u32 %s3910_s28, 6 }
  0x5e   : > { %s540_s19 = scalar_lea.vmem [#allocation12], %s4677_s21 }
  0x5f   : > { %s547_s29 = sshll.u32 %s540_s19, 4  ;;  %s3966_s29 = int_to_ptr.vmem [resolvable:$true] %s547_s29 }
  0x62   : > { %s3962_s9 = scalar_lea.hbm %s4676_s6, %s3082_s13  ;;  %s3438_s13 = scalar_lea.hbm %s4676_s6, 6144 }
  0x63   : > { %s3433_s4 = scalar_lea.hbm %s3962_s9, 3072  ;;  %p3439_p1 = scmp.lt.u32.totalorder %s3962_s9, %s4676_s6 }
  0x64   : > { %p3434_p8 = scmp.ne.s32.totalorder %s3962_s9, %s3433_s4  ;;  %p3440_p4 = scmp.lt.u32.totalorder %s3438_s13, %s3433_s4 }
  0x65   : > { %p3442_p6 = scmp.lt.u32.totalorder %s3433_s4, %s3962_s9 }
  0x66   : > { %p3436_p10 = pnand %p3434_p8, %p3933_p13  ;;  %p3441_p5 = por %p3440_p4, %p3439_p1 }
  0x68   : > { %p3437_p2 = pneg %p3436_p10  ;;  %p3443_p9 = por %p3442_p6, %p3441_p5 }
  0x6a   : > { %p3444_p12 = pnand %p3443_p9, %p3437_p2 }
  0x6c   : > { %3447 = shalt.err (!%p3444_p12)
}
  0x6d   : > { %s3448_s21 = scalar_lea.vmem %s3966_s29, 3072  ;;  %s3719_s19 = smov [#allocation12]  }
  0x6e   : > { %p3449_p0 = scmp.ne.s32.totalorder %s3966_s29, %s3448_s21  ;;  %s3453_s5 = sshll.u32 %s3719_s19, 4  ;;  %s3454_s5 = int_to_ptr.vmem [resolvable:$false] %s3453_s5 }
  0x6f   : > { %s3455_s18 = scalar_lea.vmem %s3454_s5, 6144  ;;  %p3456_p8 = scmp.lt.s32.totalorder %s3966_s29, %s3454_s5 }
  0x70   : > { %p3451_p3 = pnand %p3449_p0, %p3933_p13  ;;  %p3457_p10 = scmp.lt.s32.totalorder %s3455_s18, %s3448_s21 }
  0x72   : > { %p3452_p7 = pneg %p3451_p3  ;;  %p3458_p1 = por %p3457_p10, %p3456_p8 }
  0x74   : > { %p3459_p4 = pnand %p3458_p1, %p3452_p7 }
  0x76   : > { %3462 = shalt.err (!%p3459_p4)
}
  0x77   : > { %s3720_s4 = smov 192   ;;  %s3721_s13 = smov 12  }
  0x78   : > { %3134 = dma.hbm_to_vmem [thread:$0]  (!%p3921_p11), %s3962_s9, 3072, %s3966_s29, %s3927_s15, %s3720_s4, %s3720_s4, %s3721_s13  }
  0x79   : > { %s2912_s7 = sshll.u32 %s3713_s24, 10  ;;  %s4678_s8 = sld [smem:[#allocation32_spill]] }
  0x7a   : > { %s568_s21 = scalar_lea.vmem [#allocation13], %s2776_s16 }
  0x7b   : > { %s575_s18 = sshll.u32 %s568_s21, 4  ;;  %s3999_s18 = int_to_ptr.vmem [resolvable:$true] %s575_s18 }
  0x7f   : > { %s3995_s5 = scalar_lea.hbm %s4678_s8, %s2912_s7  ;;  %s3468_s4 = scalar_lea.hbm %s4678_s8, 2048 }
  0x80   : > { %s3463_s6 = scalar_lea.hbm %s3995_s5, 1024  ;;  %p3469_p9 = scmp.lt.u32.totalorder %s3995_s5, %s4678_s8 }
  0x81   : > { %p3464_p2 = scmp.ne.s32.totalorder %s3995_s5, %s3463_s6  ;;  %p3470_p12 = scmp.lt.u32.totalorder %s3468_s4, %s3463_s6 }
  0x82   : > { %p3472_p3 = scmp.lt.u32.totalorder %s3463_s6, %s3995_s5 }
  0x83   : > { %p3466_p5 = pnand %p3464_p2, %p3933_p13  ;;  %p3471_p0 = por %p3470_p12, %p3469_p9 }
  0x85   : > { %p3467_p6 = pneg %p3466_p5  ;;  %p3473_p7 = por %p3472_p3, %p3471_p0 }
  0x87   : > { %p3474_p8 = pnand %p3473_p7, %p3467_p6 }
  0x89   : > { %3477 = shalt.err (!%p3474_p8)
}
  0x8a   : > { %s3478_s16 = scalar_lea.vmem %s3999_s18, 1024  ;;  %s3722_s10 = smov [#allocation13]  }
  0x8b   : > { %p3479_p10 = scmp.ne.s32.totalorder %s3999_s18, %s3478_s16  ;;  %s3483_s19 = sshll.u32 %s3722_s10, 4  ;;  %s3484_s19 = int_to_ptr.vmem [resolvable:$false] %s3483_s19 }
  0x8c   : > { %s3485_s21 = scalar_lea.vmem %s3484_s19, 2048  ;;  %p3486_p2 = scmp.lt.s32.totalorder %s3999_s18, %s3484_s19 }
  0x8d   : > { %p3481_p1 = pnand %p3479_p10, %p3933_p13  ;;  %p3487_p5 = scmp.lt.s32.totalorder %s3485_s21, %s3478_s16 }
  0x8f   : > { %p3482_p4 = pneg %p3481_p1  ;;  %p3488_p9 = por %p3487_p5, %p3486_p2 }
  0x91   : > { %p3489_p12 = pnand %p3488_p9, %p3482_p4 }
  0x93   : > { %3492 = shalt.err (!%p3489_p12)
}
  0x94   : > { %s4645_s6 = smov 64   ;;  %s4646_s9 = smov 4  }
  0x95   : > { %3137 = dma.hbm_to_vmem [thread:$0]  (!%p3921_p11), %s3995_s5, 1024, %s3999_s18, %s3927_s15, %s4645_s6, %s4645_s6, %s4646_s9  }
  0x96   : > { %s3725_s29 = smov [#allocation6]   ;;  %s4647_s13 = sshll.u32 %s3910_s28, 8 }
  0x97   : > { %s477_s4 = sshll.u32 %s3725_s29, 4  ;;  %s4679_s1 = sld [smem:[#allocation25_spill]]  ;;  %s478_s4 = int_to_ptr.vmem [resolvable:$true] %s477_s4 }
  0x98   : > { %p4680_p0 = scmp.ne.s32.totalorder %s4671_s11, 0 }
  0x9d   : > { %s3493_s10 = scalar_lea.hbm %s4679_s1, 256 }
  0x9e   : > { %p3494_p6 = scmp.ne.s32.totalorder %s4679_s1, %s3493_s10  ;;  %p3500_p8 = scmp.lt.u32.totalorder %s3493_s10, %s4679_s1 }
  0xa0   : > { %p3496_p3 = pnand %p3494_p6, %p4680_p0 }
  0xa2   : > { %p3497_p7 = pneg %p3496_p3 }
  0xa4   : > { %p3502_p10 = pnand %p3500_p8, %p3497_p7 }
  0xa6   : > { %3505 = shalt.err (!%p3502_p10)
}
  0xa7   : > { %s3506_s5 = scalar_lea.vmem %s478_s4, 256  ;;  %p3514_p5 = scmp.lt.s32.totalorder %s478_s4, %s478_s4 }
  0xa8   : > { %p3507_p1 = scmp.ne.s32.totalorder %s478_s4, %s3506_s5  ;;  %p3515_p9 = scmp.lt.s32.totalorder %s3506_s5, %s3506_s5 }
  0xaa   : > { %p3509_p4 = pnand %p3507_p1, %p4680_p0  ;;  %p3516_p12 = por %p3515_p9, %p3514_p5 }
  0xac   : > { %p3510_p2 = pneg %p3509_p4 }
  0xae   : > { %p3517_p11 = pnand %p3516_p12, %p3510_p2 }
  0xb0   : > { %3520 = shalt.err (!%p3517_p11)
}
  0xb1   : > { %p4681_p6 = scmp.ne.s32.totalorder %s4667_s30, 0  ;;  %s4682_s18 = smov 8  }
  0xb2   : > { %s4683_s29 = smov 128   ;;  %s4648_s7 = sshll.u32 %s3713_s24, 12 }
  0xb3   : > { %3121 = dma.hbm_to_vmem [thread:$0]  (!%p4681_p6), %s4679_s1, 256, %s478_s4, [#allocation7], %s4683_s29, %s4683_s29, %s4682_s18  }
  0xb4   : > { %s607_s16 = scalar_lea.vmem [#allocation14], %s4647_s13  ;;  %s4684_s12 = sld [smem:[#allocation36_spill]] }
  0xb5   : > { %s614_s10 = sshll.u32 %s607_s16, 4  ;;  %s4058_s10 = int_to_ptr.vmem [resolvable:$true] %s614_s10 }
  0xba   : > { %s4056_s5 = scalar_lea.hbm %s4684_s12, %s4648_s7  ;;  %s3526_s29 = scalar_lea.hbm %s4684_s12, 8192 }
  0xbb   : > { %s3521_s8 = scalar_lea.hbm %s4056_s5, 4096  ;;  %p3527_p8 = scmp.lt.u32.totalorder %s4056_s5, %s4684_s12 }
  0xbc   : > { %p3522_p11 = scmp.ne.s32.totalorder %s4056_s5, %s3521_s8  ;;  %p3528_p10 = scmp.lt.u32.totalorder %s3526_s29, %s3521_s8 }
  0xbd   : > { %p3530_p4 = scmp.lt.u32.totalorder %s3521_s8, %s4056_s5 }
  0xbe   : > { %p3524_p3 = pnand %p3522_p11, %p3933_p13  ;;  %p3529_p1 = por %p3528_p10, %p3527_p8 }
  0xc0   : > { %p3525_p7 = pneg %p3524_p3  ;;  %p3531_p2 = por %p3530_p4, %p3529_p1 }
  0xc2   : > { %p3532_p5 = pnand %p3531_p2, %p3525_p7 }
  0xc4   : > { %3535 = shalt.err (!%p3532_p5)
}
  0xc5   : > { %s3536_s19 = scalar_lea.vmem %s4058_s10, 4096  ;;  %s3726_s21 = smov [#allocation14]  }
  0xc6   : > { %p3537_p9 = scmp.ne.s32.totalorder %s4058_s10, %s3536_s19  ;;  %s3541_s4 = sshll.u32 %s3726_s21, 4  ;;  %s3542_s4 = int_to_ptr.vmem [resolvable:$false] %s3541_s4 }
  0xc7   : > { %s3543_s18 = scalar_lea.vmem %s3542_s4, 8192  ;;  %p3544_p3 = scmp.lt.s32.totalorder %s4058_s10, %s3542_s4 }
  0xc8   : > { %p3539_p12 = pnand %p3537_p9, %p3933_p13  ;;  %p3545_p6 = scmp.lt.s32.totalorder %s3543_s18, %s3536_s19 }
  0xca   : > { %p3540_p11 = pneg %p3539_p12  ;;  %p3546_p8 = por %p3545_p6, %p3544_p3 }
  0xcc   : > { %p3547_p10 = pnand %p3546_p8, %p3540_p11 }
  0xce   : > { %3550 = shalt.err (!%p3547_p10)
}
  0xcf   : > { %s3727_s8 = smov 256   ;;  %s3728_s29 = smov 16  }
  0xd0   : > { %p4685_p7 = scmp.ne.s32.totalorder %s4674_s17, 0  ;;  %s3729_s20 = smov [#allocation8]  }
  0xd1   : > { %s491_s16 = sshll.u32 %s3729_s20, 4  ;;  %s3730_s6 = smov [#allocation9]   ;;  %s492_s16 = int_to_ptr.vmem [resolvable:$true] %s491_s16 }
  0xd2   : > { %3140 = dma.hbm_to_vmem [thread:$0]  (!%p4685_p7), %s4056_s5, 4096, %s4058_s10, %s3927_s15, %s3727_s8, %s3727_s8, %s3728_s29  }
  0xd3   : > { %s502_s21 = sshll.u32 %s3730_s6, 4  ;;  %s4686_s2 = sld [smem:[#allocation26_spill]]  ;;  %s4082_s21 = int_to_ptr.vmem [resolvable:$true] %s502_s21 }
  0xd9   : > { %s3551_s18 = scalar_lea.hbm %s4686_s2, 16 }
  0xda   : > { %p3552_p6 = scmp.ne.s32.totalorder %s4686_s2, %s3551_s18  ;;  %p3558_p2 = scmp.lt.u32.totalorder %s3551_s18, %s4686_s2 }
  0xdc   : > { %p3554_p1 = pnand %p3552_p6, %p4680_p0 }
  0xde   : > { %p3555_p4 = pneg %p3554_p1 }
  0xe0   : > { %p3560_p5 = pnand %p3558_p2, %p3555_p4 }
  0xe2   : > { %3563 = shalt.err (!%p3560_p5)
}
  0xe3   : > { %s3564_s6 = scalar_lea.vmem %s492_s16, 16  ;;  %s3571_s5 = scalar_lea.vmem %s492_s16, 32 }
  0xe4   : > { %p3565_p9 = scmp.ne.s32.totalorder %s492_s16, %s3564_s6  ;;  %p3572_p3 = scmp.lt.s32.totalorder %s492_s16, %s492_s16 }
  0xe5   : > { %p3573_p8 = scmp.lt.s32.totalorder %s3571_s5, %s3564_s6 }
  0xe6   : > { %p3567_p12 = pnand %p3565_p9, %p4680_p0 }
  0xe7   : > { %p3574_p10 = por %p3573_p8, %p3572_p3 }
  0xe8   : > { %p3568_p11 = pneg %p3567_p12 }
  0xea   : > { %p3575_p7 = pnand %p3574_p10, %p3568_p11 }
  0xec   : > { %3578 = shalt.err (!%p3575_p7)
}
  0xed   : > { %p4687_p6 = scmp.ne.s32.totalorder %s4667_s30, 0  ;;  %s4688_s3 = sld [smem:[#allocation27_spill]] }
  0xef   : > { %3124 = dma.hbm_to_vmem [thread:$0]  (!%p4687_p6), %s4686_s2, 16, %s492_s16, [#allocation7]  }
  0xf3   : > { %s3579_s29 = scalar_lea.hbm %s4688_s3, 16 }
  0xf4   : > { %p3580_p1 = scmp.ne.s32.totalorder %s4688_s3, %s3579_s29  ;;  %p3586_p7 = scmp.lt.u32.totalorder %s3579_s29, %s4688_s3 }
  0xf6   : > { %p3582_p4 = pnand %p3580_p1, %p4680_p0 }
  0xf8   : > { %p3583_p2 = pneg %p3582_p4 }
  0xfa   : > { %p3588_p5 = pnand %p3586_p7, %p3583_p2 }
  0xfc   : > { %3591 = shalt.err (!%p3588_p5)
}
  0xfd   : > { %s3592_s16 = scalar_lea.vmem %s4082_s21, 16  ;;  %s3599_s10 = scalar_lea.vmem %s4082_s21, 32 }
  0xfe   : > { %p3593_p9 = scmp.ne.s32.totalorder %s4082_s21, %s3592_s16  ;;  %p3600_p3 = scmp.lt.s32.totalorder %s4082_s21, %s4082_s21 }
  0xff   : > { %p3601_p8 = scmp.lt.s32.totalorder %s3599_s10, %s3592_s16 }
 0x100   : > { %p3595_p12 = pnand %p3593_p9, %p4680_p0 }
 0x101   : > { %p3602_p10 = por %p3601_p8, %p3600_p3 }
 0x102   : > { %p3596_p11 = pneg %p3595_p12 }
 0x104   : > { %p3603_p1 = pnand %p3602_p10, %p3596_p11 }
 0x106   : > { %3606 = shalt.err (!%p3603_p1)
}
 0x107   : > { %3127 = dma.hbm_to_vmem [thread:$0]  (!%p4687_p6), %s4688_s3, 16, %s4082_s21, [#allocation10]  }
 0x108   : > { %s4689_s11 = sshll.u32 %s3713_s24, 12  ;;  %s4690_s8 = sshll.u32 %s3910_s28, 8 }
 0x109   : > { %s4131_s7 = scalar_lea.hbm %s4626_s14, %s4689_s11  ;;  %s635_s30 = scalar_lea.vmem [#allocation15], %s4690_s8 }
 0x10a   : > { %s642_s29 = sshll.u32 %s635_s30, 4  ;;  %s3607_s20 = scalar_lea.hbm %s4131_s7, 4096  ;;  %s4135_s29 = int_to_ptr.vmem [resolvable:$true] %s642_s29 }
 0x10b   : > { %p3608_p0 = scmp.ne.s32.totalorder %s4131_s7, %s3607_s20  ;;  %s3612_s19 = scalar_lea.hbm %s4626_s14, 8192 }
 0x10c   : > { %p3613_p2 = scmp.lt.u32.totalorder %s4131_s7, %s4626_s14  ;;  %p3614_p7 = scmp.lt.u32.totalorder %s3612_s19, %s3607_s20 }
 0x10d   : > { %p3610_p4 = pnand %p3608_p0, %p3933_p13  ;;  %p3616_p9 = scmp.lt.u32.totalorder %s3607_s20, %s4131_s7 }
 0x10e   : > { %p3615_p5 = por %p3614_p7, %p3613_p2 }
 0x10f   : > { %p3611_p6 = pneg %p3610_p4 }
 0x110   : > { %p3617_p12 = por %p3616_p9, %p3615_p5 }
 0x112   : > { %p3618_p11 = pnand %p3617_p12, %p3611_p6 }
 0x114   : > { %3621 = shalt.err (!%p3618_p11)
}
 0x115   : > { %s3622_s28 = scalar_lea.vmem %s4135_s29, 4096  ;;  %s3731_s16 = smov [#allocation15]  }
 0x116   : > { %p3623_p3 = scmp.ne.s32.totalorder %s4135_s29, %s3622_s28  ;;  %s3627_s10 = sshll.u32 %s3731_s16, 4  ;;  %s3628_s10 = int_to_ptr.vmem [resolvable:$false] %s3627_s10 }
 0x117   : > { %s3629_s6 = scalar_lea.vmem %s3628_s10, 8192  ;;  %p3630_p1 = scmp.lt.s32.totalorder %s4135_s29, %s3628_s10 }
 0x118   : > { %p3625_p8 = pnand %p3623_p3, %p3933_p13  ;;  %p3631_p0 = scmp.lt.s32.totalorder %s3629_s6, %s3622_s28 }
 0x11a   : > { %p3626_p10 = pneg %p3625_p8  ;;  %p3632_p4 = por %p3631_p0, %p3630_p1 }
 0x11c   : > { %p3633_p2 = pnand %p3632_p4, %p3626_p10 }
 0x11e   : > { %3636 = shalt.err (!%p3633_p2)
}
 0x11f   : > { %p4691_p6 = scmp.ne.s32.totalorder %s4674_s17, 0  ;;  %s4692_s5 = smov 4  }
 0x120   : > { %s4693_s11 = smov 64   ;;  %p4694_p13 = scmp.ne.s32.totalorder %s4666_s27, 0 }
 0x121   : > { %3143 = dma.hbm_to_vmem [thread:$0]  (!%p4691_p6), %s4131_s7, 4096, %s4135_s29, %s3927_s15, %s4693_s11, %s4693_s11, %s4692_s5  }
 0x122   : > { %660 = sbr.rel (%p4694_p13) target bundleno = 3633 (0xe31), region = 84  ;;  %p4695_p7 = scmp.eq.s32.totalorder (!%p4694_p13), %s3843_s25, 0 }
 0x129   : > { %3680 = dma.done.wait (%p4695_p7), [#allocation4], 256   ;;  %p4696_p5 = pmov %p4695_p7 }
 0x12b   : > { %3682 = vsyncadd (%p4696_p5), [#allocation4], 4294967040  ;;  %p4697_p9 = pmov %p4696_p5 }
 0x12c   : > { %p4698_p12 = pmov %p4696_p5 }
 0x12d   : > { %3684 = dma.done.wait (%p4697_p9), [#allocation7], 272  }
 0x12e   : > { %3686 = vsyncadd (%p4698_p12), [#allocation7], 4294967024  ;;  %p4699_p11 = pmov %p4696_p5 }
 0x12f   : > { %p4700_p3 = pmov %p4696_p5 }
 0x130   : > { %3688 = dma.done.wait (%p4699_p11), [#allocation10], 16  }
 0x131   : > { %3690 = vsyncadd (%p4700_p3), [#allocation10], 4294967280  ;;  %s678_s27 = sand.u32 1, %s3843_s25   ;;  %s4178_s15 = sand.u32 1, %s3705_s22  }
 0x132   : > { %s679_s17 = scalar_lea.sflag [#allocation4], %s678_s27  ;;  %p4701_p8 = scmp.ne.s32.totalorder %s4665_s26, 0 }
 0x134   : > { %3692 = dma.done.wait (%p4701_p8), %s679_s17, 12304  }
 0x135   : > { %3694 = vsyncadd (%p4701_p8), %s679_s17, 4294954992  ;;  %s3083_s9 = smul.u32 192, %s4178_s15  ;;  %s2790_s13 = sshll.u32 %s4178_s15, 6 }
 0x136   : > { %s2791_s7 = sshll.u32 %s4178_s15, 8  ;;  %p803_p10 = scmp.lt.s32.totalorder %s3843_s25, 1 }
 0x137   : > { %s4704_s10 = sld [smem:[#allocation34_spill]]  ;;  %s4705_s27 = sld [smem:[#allocation31_spill]] }
 0x138   : > { %s4190_s8 = scalar_select %p803_p10, %s3843_s25, 1 }
 0x139   : > { %s4706_s0 = sld [smem:[#allocation35_spill]]  ;;  %s4707_s3 = sld [smem:[#allocation38_spill]] }
 0x13a   : > { %s3084_s24 = smul.u32 3, %s4190_s8  ;;  %s2793_s2 = sshll.u32 %s4190_s8, 2 }
 0x13b   : > { %s4708_s4 = sld [smem:[#allocation37_spill]]  ;;  %s4224_s28 = scalar_lea.vmem [#allocation12], %s3083_s9 }
 0x13c   : > { %s4226_s16 = scalar_lea.vmem [#allocation13], %s2790_s13  ;;  %p4709_p1 = scmp.ne.s32.totalorder %s3843_s25, 0 }
 0x13d   : > { %s815_s6 = scalar_lea.vmem %s4704_s10, %s4190_s8  ;;  %s4208_s17 = scalar_lea.vmem %s4705_s27, %s3084_s24  ;;  %v831_v0 = vld [vmem:[#allocation3] sm:$0xff] (!%p4709_p1)  ;;  %v832_v1 = vld [vmem:[#allocation3 + $0x8] sm:$0xff] (!%p4709_p1) }
 0x13e   : > { %s4228_s24 = scalar_lea.vmem [#allocation14], %s2791_s7  ;;  %s4230_s10 = scalar_lea.vmem [#allocation15], %s2791_s7  ;;  %833 = vst [vmem:[#allocation2] sm:$0xff] (!%p4709_p1), %v831_v0  ;;  %834 = vst [vmem:[#allocation2 + $0x8] sm:$0xff] (!%p4709_p1), %v832_v1 }
 0x13f   : > { %s818_s1 = scalar_lea.vmem %s4706_s0, %s4190_s8  ;;  %s825_s12 = scalar_lea.vmem %s4707_s3, %s4190_s8 }
 0x140   : > { %830 = sbr.rel (%p4709_p1) target bundleno = 327 (0x147), region = 124 }
 0x141   : > { %s4222_s18 = scalar_lea.vmem %s4708_s4, %s2793_s2 }
 0x147 PF: > { %v4234_v2 = vld [vmem:[#allocation2] sm:$0xff]  ;;  %v4236_v3 = vld [vmem:[#allocation2 + $0x8] sm:$0xff]  ;;  %v3732_v6 = vmov 0.0   ;;  %v3733_v32 = vmov 0   ;;  %vm3734_vm0 = vmmov 0   ;;  %s4710_s2 = scalar_lea.vmem [#allocation11], %s4178_s15  ;;  %v913_v55 = vlaneseq }
 0x148   : > { %839 = vadd.xlane.f32.xlu0 %v4234_v2  ;;  %v3211_v4 = vld [vmem:[%s4224_s28 + $0x4] ss:$12 sps:$4 sm:$0xff]   ;;  %v3213_v5 = vld [vmem:[%s4224_s28] ss:$12 sps:$4 sm:$0xff]   ;;  %2993 = vmatprep.subr.bf16.mxu1 %v3732_v6  ;;  %v3214_v7 = vld [vmem:[%s4224_s28 + $0x8] ss:$12 sps:$4 sm:$0xff]  }
 0x149   : > { %v3215_v8 = vld [vmem:[%s4224_s28 + $0x1c] ss:$12 sps:$4 sm:$0xff]   ;;  %1056 = vmatprep.subr.bf16.mxu0 %v3211_v4  ;;  %2994 = vmatpush3.bf16.msra.mxu1 %v3214_v7  ;;  %v3217_v17 = vld [vmem:[%s4224_s28 + $0x18] ss:$12 sps:$4 sm:$0xff]   ;;  %v3218_v18 = vld [vmem:[%s4224_s28 + $0x20] ss:$12 sps:$4 sm:$0xff]  }
 0x14a   : > { %1057 = vmatpush1.bf16.msra.mxu0 %v3213_v5  ;;  %2995 = vmatprep.subr.bf16.mxu1 %v3732_v6  ;;  %v3219_v19 = vld [vmem:[%s4224_s28 + $0x34] ss:$12 sps:$4 sm:$0xff]   ;;  %v3221_v20 = vld [vmem:[%s4224_s28 + $0x30] ss:$12 sps:$4 sm:$0xff]   ;;  %v3222_v21 = vld [vmem:[%s4224_s28 + $0x38] ss:$12 sps:$4 sm:$0xff]  }
 0x14b   : > { %1058 = vmatprep.subr.bf16.mxu0 %v3215_v8  ;;  %v3223_v22 = vld [vmem:[%s4224_s28 + $0x4c] ss:$12 sps:$4 sm:$0xff]   ;;  %v3225_v23 = vld [vmem:[%s4224_s28 + $0x48] ss:$12 sps:$4 sm:$0xff]   ;;  %v3226_v24 = vld [vmem:[%s4224_s28 + $0x50] ss:$12 sps:$4 sm:$0xff]   ;;  %1088 = vmatprep.mubr.bf16.mxu0 %v3733_v32 }
 0x14c   : > { %841 = vadd.xlane.f32.xlu0 %v4236_v3  ;;  %v3227_v25 = vld [vmem:[%s4224_s28 + $0x64] ss:$12 sps:$4 sm:$0xff]   ;;  %v3229_v26 = vld [vmem:[%s4224_s28 + $0x60] ss:$12 sps:$4 sm:$0xff]   ;;  %v3230_v27 = vld [vmem:[%s4224_s28 + $0x68] ss:$12 sps:$4 sm:$0xff]   ;;  %3009 = vmatprep.mubr.msk.bf16.mxu1 %vm3734_vm0, %v3732_v6 }
 0x14d   : > { %2996 = vmatpush3.bf16.msra.mxu1 %v3218_v18  ;;  %v3231_v28 = vld [vmem:[%s4224_s28 + $0x7c] ss:$12 sps:$4 sm:$0xff]   ;;  %v3233_v29 = vld [vmem:[%s4224_s28 + $0x78] ss:$12 sps:$4 sm:$0xff]   ;;  %v3234_v30 = vld [vmem:[%s4224_s28 + $0x80] ss:$12 sps:$4 sm:$0xff]  }
 0x14e   : > { %1059 = vmatpush1.bf16.msra.mxu0 %v3217_v17  ;;  %2997 = vmatprep.subr.bf16.mxu1 %v3732_v6  ;;  %v3235_v31 = vld [vmem:[%s4224_s28 + $0x94] ss:$12 sps:$4 sm:$0xff]   ;;  %v3237_v33 = vld [vmem:[%s4224_s28 + $0x90] ss:$12 sps:$4 sm:$0xff]   ;;  %v3238_v34 = vld [vmem:[%s4224_s28 + $0x98] ss:$12 sps:$4 sm:$0xff]  }
 0x14f   : > { %1060 = vmatprep.subr.bf16.mxu0 %v3219_v19  ;;  %v3239_v35 = vld [vmem:[%s4224_s28 + $0xac] ss:$12 sps:$4 sm:$0xff]   ;;  %v3241_v36 = vld [vmem:[%s4224_s28 + $0xa8] ss:$12 sps:$4 sm:$0xff]   ;;  %v3242_v37 = vld [vmem:[%s4224_s28 + $0xb0] ss:$12 sps:$4 sm:$0xff]  }
 0x150   : > { %v2795_v46 = vld [vmem:[%s4710_s2] ss:$0 sm:$0xff]  ;;  %s4711_s9 = sld [smem:[#allocation29_spill]]  ;;  %v4300_v56 = vshrl.u32 %v913_v55, 7  ;;  %vm1150_vm1 = vcmask 523264   ;;  %vm1271_vm2 = vcmask 1043456  }
 0x151   : > { %2998 = vmatpush3.bf16.msra.mxu1 %v3222_v21  ;;  %v911_v58 = vld [vmem:[%s4208_s17] sm:$0x7]  ;;  %vm1243_vm3 = vcmask 64512   ;;  %s3735_s15 = smov 64   ;;  %s4713_s5 = sld [smem:[#allocation33_spill]] }
 0x152   : > { %1061 = vmatpush1.bf16.msra.mxu0 %v3221_v20  ;;  %2999 = vmatprep.subr.bf16.mxu1 %v3732_v6  ;;  %v919_v57 = vsub.s32 1, %v4300_v56  ;;  %v915_v59 = vsub.s32 0, %v4300_v56  ;;  %v923_v60 = vsub.s32 2, %v4300_v56  ;;  %p2905_p0 = scmp.ne.s32.totalorder %s3843_s25, 1 }
 0x153   : > { %1062 = vmatprep.subr.bf16.mxu0 %v3223_v22 }
 0x154   : > { %v920_v61 = vrot.slane %v911_v58, %v919_v57  ;;  %v916_v62 = vrot.slane %v911_v58, %v915_v59  ;;  %v924_v1 = vrot.slane %v911_v58, %v923_v60 }
 0x155   : > { %3000 = vmatpush3.bf16.msra.mxu1 %v3226_v24 }
 0x156   : > { %1063 = vmatpush1.bf16.msra.mxu0 %v3225_v23  ;;  %3001 = vmatprep.subr.bf16.mxu1 %v3732_v6  ;;  %s4712_s13 = scalar_lea.vmem %s4711_s9, %s4190_s8 }
 0x157   : > { %1064 = vmatprep.subr.bf16.mxu0 %v3227_v25  ;;  %v2796_v50 = vld [vmem:[%s4712_s13] ss:$0 sm:$0xff]  ;;  %s4714_s11 = scalar_lea.vmem %s4713_s5, %s4190_s8 }
 0x159   : > { %3002 = vmatpush3.bf16.msra.mxu1 %v3230_v27  ;;  %v4329_v27 = vld [vmem:[#allocation6] sm:$0xff] }
 0x15a   : > { %1065 = vmatpush1.bf16.msra.mxu0 %v3229_v26  ;;  %3003 = vmatprep.subr.bf16.mxu1 %v3732_v6 }
 0x15b   : > { %1066 = vmatprep.subr.bf16.mxu0 %v3231_v28 }
 0x15d   : > { %3004 = vmatpush3.bf16.msra.mxu1 %v3234_v30 }
 0x15e   : > { %1067 = vmatpush1.bf16.msra.mxu0 %v3233_v29  ;;  %3005 = vmatprep.subr.bf16.mxu1 %v3732_v6 }
 0x15f   : > { %1068 = vmatprep.subr.bf16.mxu0 %v3235_v31 }
 0x161   : > { %3006 = vmatpush3.bf16.msra.mxu1 %v3238_v34 }
 0x162   : > { %1069 = vmatpush1.bf16.msra.mxu0 %v3237_v33  ;;  %3007 = vmatprep.subr.bf16.mxu1 %v3732_v6 }
 0x163   : > { %1070 = vmatprep.subr.bf16.mxu0 %v3239_v35  ;;  %v4333_v35 = vld [vmem:[#allocation6 + $0x8] sm:$0xff] }
 0x165   : > { %3008 = vmatpush3.bf16.msra.mxu1 %v3242_v37 }
 0x166   : > { %1071 = vmatpush1.bf16.msra.mxu0 %v3241_v36  ;;  %3013 = vmatprep.subr.bf16.mxu1 %v3732_v6 }
 0x167   : > { %3037 = vmatprep.subr.bf16.mxu0 %v3732_v6 }
 0x1d5   : > { %v840_v9 = vpop.xlane.xlu0 %839 }
 0x1d6   : > { %v844_v10 = vmul.f32 0.0078125, %v840_v9 }
 0x1d8   : > { %v4247_v11 = vsub.f32 %v4234_v2, %v844_v10 }
 0x1d9   : > { %v842_v12 = vpop.xlane.xlu0 %841 }
 0x1da   : > { %v845_v13 = vmul.f32 0.0078125, %v842_v12  ;;  %v848_v14 = vmul.f32 %v4247_v11, %v4247_v11 }
 0x1dc   : > { %v4252_v15 = vsub.f32 %v4236_v3, %v845_v13  ;;  %850 = vadd.xlane.f32.xlu1 %v848_v14 }
 0x1de   : > { %v849_v16 = vmul.f32 %v4252_v15, %v4252_v15 }
 0x1e0   : > { %852 = vadd.xlane.f32.xlu1 %v849_v16 }
 0x269   : > { %v851_v38 = vpop.xlane.xlu1 %850 }
 0x26a   : > { %v854_v39 = vmul.f32 0.0078125, %v851_v38 }
 0x26c   : > { %v856_v40 = vadd.f32 1e-05, %v854_v39 }
 0x26d   : > { %v853_v41 = vpop.xlane.xlu1 %852 }
 0x26e   : > { %3331 = vrsqrt.f32 %v856_v40  ;;  %v855_v42 = vmul.f32 0.0078125, %v853_v41 }
 0x270   : > { %v857_v43 = vadd.f32 1e-05, %v855_v42 }
 0x272   : > { %3333 = vrsqrt.f32 %v857_v43 }
 0x278   : > { %v3332_v44 = vpop.eup %3331 }
 0x279   : > { %v860_v45 = vmul.f32 %v3332_v44, %v4247_v11 }
 0x27b   : > { %v868_v49 = vmul.f32 %v2795_v46, %v860_v45 }
 0x27c   : > { %v3334_v47 = vpop.eup %3333 }
 0x27d   : > { %v861_v48 = vmul.f32 %v3334_v47, %v4252_v15  ;;  %v876_v52 = vadd.f32 %v2796_v50, %v868_v49 }
 0x27f   : > { %v869_v51 = vmul.f32 %v2795_v46, %v861_v48 }
 0x281   : > { %v877_v53 = vadd.f32 %v2796_v50, %v869_v51 }
 0x283   : > { %v878_v54 = vpack.c.bf16 %v877_v53, %v876_v52 }
 0x285   : > { %1089 = vmatmul.mubr.bf16.vlgmr.msra.gmra.mrb[0].mxu0 %v878_v54  ;;  %3010 = vmatmul.mubr.bf16.vlgmr.msra.gmra.mrb[0].mxu1 %v878_v54 }
 0x286   : > { %3015 = vmatprep.mubr.msk.bf16.mxu1 %vm3734_vm0, %v3732_v6  ;;  %3039 = vmatprep.mubr.msk.bf16.mxu0 %vm3734_vm0, %v3732_v6 }
 0x358   : > { %v1090_v63 = vpop.f32.mrb[0].mxu0  ;;  %v1133_v0 = vpop.f32.mrb[0].mxu1 }
 0x359   : > { %v1092_v4 = vpop.f32.mrb[1].mxu0  ;;  %v3011_v5 = vpop.f32.mrb[1].mxu1  ;;  %v1091_v13 = vadd.f32 %v1090_v63, %v916_v62  ;;  %v1134_v21 = vadd.f32 %v1133_v0, %v924_v1 }
 0x35a   : > { %v1093_v7 = vadd.f32 %v1092_v4, %v920_v61  ;;  %v1094_v8 = vpop.f32.mrb[2].mxu0  ;;  %v1136_v9 = vpop.f32.mrb[2].mxu1 }
 0x35b   : > { %v4312_v10 = vadd.f32 %v1136_v9, %v924_v1  ;;  %v1096_v11 = vpop.f32.mrb[3].mxu0  ;;  %v3012_v12 = vpop.f32.mrb[3].mxu1  ;;  %v1140_v17 = vmul.f32 0.125, %v1091_v13  ;;  %v1095_v20 = vadd.f32 %v1094_v8, %v916_v62  ;;  %v4321_v24 = vpack.c.bf16 %v1134_v21, %v1134_v21 }
 0x35c   : > { %v1146_v14 = vpack.c.bf16 %v1093_v7, %v1093_v7  ;;  %v1097_v16 = vadd.f32 %v1096_v11, %v920_v61 }
 0x35d   : > { %v1144_v19 = vpack.c.bf16 %v1140_v17, %v1140_v17  ;;  %v1141_v23 = vmul.f32 0.125, %v1095_v20  ;;  %v1273_v26 = vsel %vm1271_vm2, %v4321_v24, 0  ;;  %v1149_v62 = vpack.c.bf16 %v4312_v10, %v4312_v10 }
 0x35e   : > { %v1155_v15 = vsel %vm1150_vm1, %v1146_v14, 0  ;;  %v1147_v18 = vpack.c.bf16 %v1097_v16, %v1097_v16 }
 0x35f   : > { %3014 = vmatpush3.bf16.xpose.msra.mxu1 %v1155_v15  ;;  %v1145_v25 = vpack.c.bf16 %v1141_v23, %v1141_v23  ;;  %v1319_v4 = vsel %vm1271_vm2, %v1149_v62, 0 }
 0x360   : > { %3019 = vmatprep.subr.bf16.mxu1 %v3732_v6  ;;  %v1201_v22 = vsel %vm1150_vm1, %v1147_v18, 0 }
 0x366   : > { %3016 = vmatmul.mubr.msk.bf16.vlgmr.msra.gmra.mrb[4].mxu1 %vm1150_vm1, %v1144_v19 }
 0x367   : > { %3020 = vmatpush3.bf16.xpose.msra.mxu1 %v1201_v22  ;;  %3021 = vmatprep.mubr.msk.bf16.mxu1 %vm3734_vm0, %v3732_v6 }
 0x368   : > { %3025 = vmatprep.subr.bf16.mxu1 %v3732_v6 }
 0x36e   : > { %3022 = vmatmul.mubr.msk.bf16.vlgmr.msra.gmra.mrb[8].mxu1 %vm1150_vm1, %v1145_v25 }
 0x36f   : > { %3026 = vmatpush3.bf16.msra.mxu1 %v1273_v26  ;;  %3027 = vmatprep.mubr.msk.bf16.mxu1 %vm3734_vm0, %v3732_v6 }
 0x370   : > { %3031 = vmatprep.subr.bf16.mxu1 %v3732_v6 }
 0x439   : > { %v1191_v28 = vpop.f32.mrb[4].mxu1 }
 0x43a   : > { %v1192_v29 = vadd.f32 %v1191_v28, %v4329_v27  ;;  %v3017_v30 = vpop.f32.mrb[5].mxu1 }
 0x43b   : > { %v1194_v31 = vpop.f32.mrb[6].mxu1 }
 0x43c   : > { %v3018_v33 = vpop.f32.mrb[7].mxu1  ;;  %v1244_v34 = vsel %vm1243_vm3, %v1192_v29, -inf }
 0x43d   : > { %1245 = vmax.xlane.f32.xlu0 %v1244_v34 }
 0x441   : > { %v1237_v36 = vpop.f32.mrb[8].mxu1 }
 0x442   : > { %v1238_v37 = vadd.f32 %v1237_v36, %v4333_v35  ;;  %v3023_v38 = vpop.f32.mrb[9].mxu1 }
 0x443   : > { %v1240_v39 = vpop.f32.mrb[10].mxu1 }
 0x444   : > { %v3024_v40 = vpop.f32.mrb[11].mxu1  ;;  %v1247_v41 = vsel %vm1243_vm3, %v1238_v37, -inf }
 0x445   : > { %1248 = vmax.xlane.f32.xlu1 %v1247_v41 }
 0x456   : > { %1417 = vrot.lane.b32.xlu1 %v1147_v18, %s3735_s15 }
 0x4ca   : > { %v1246_v42 = vpop.xlane.xlu0 %1245 }
 0x4cb   : > { %v1250_v43 = vsub.f32 %v1192_v29, %v1246_v42 }
 0x4cd   : > { %v1252_v44 = vmul.f32 1.442695, %v1250_v43 }
 0x4cf   : > { %3335 = vpow2.f32 %v1252_v44 }
 0x4d2   : > { %v1249_v45 = vpop.xlane.xlu1 %1248 }
 0x4d3   : > { %v1251_v46 = vsub.f32 %v1238_v37, %v1249_v45 }
 0x4d5   : > { %v1254_v47 = vmul.f32 1.442695, %v1251_v46 }
 0x4d6   : > { %v1418_v53 = vpop.permute.xlu1 %1417 }
 0x4d7   : > { %3337 = vpow2.f32 %v1254_v47  ;;  %v1423_v9 = vsel %vm1150_vm1, %v1418_v53, 0 }
 0x4d9   : > { %v3336_v48 = vpop.eup %3335 }
 0x4da   : > { %v1256_v49 = vsel %vm1243_vm3, %v3336_v48, 0.0 }
 0x4db   : > { %1257 = vadd.xlane.f32.xlu0 %v1256_v49 }
 0x4e1   : > { %v3338_v50 = vpop.eup %3337 }
 0x4e2   : > { %v1259_v51 = vsel %vm1243_vm3, %v3338_v50, 0.0 }
 0x4e3   : > { %1260 = vadd.xlane.f32.xlu1 %v1259_v51 }
 0x4f1   : > { %1365 = vrot.lane.b32.xlu0 %v1146_v14, %s3735_s15 }
 0x4f4   : > { %1362 = vrot.lane.b32.xlu1 %v1144_v19, %s3735_s15 }
 0x4f8   : > { %1414 = vrot.lane.b32.xlu1 %v1145_v25, %s3735_s15 }
 0x568   : > { %v1258_v52 = vpop.xlane.xlu0 %1257 }
 0x569   : > { %3339 = vrcp.f32 %v1258_v52 }
 0x56c   : > { %v1366_v54 = vpop.permute.xlu0 %1365 }
 0x56d   : > { %v1371_v55 = vsel %vm1150_vm1, %v1366_v54, 0  ;;  %v3243_v54 = vld [vmem:[%s4226_s16] sm:$0xff]  }
 0x56e   : > { %3038 = vmatpush3.bf16.xpose.msra.mxu0 %v1371_v55  ;;  %v3244_v55 = vld [vmem:[%s4226_s16 + $0x8] sm:$0xff]  }
 0x56f   : > { %3049 = vmatprep.subr.bf16.mxu0 %v3732_v6 }
 0x570   : > { %v1261_v58 = vpop.xlane.xlu1 %1260 }
 0x571   : > { %3341 = vrcp.f32 %v1261_v58  ;;  %v3245_v58 = vld [vmem:[%s4226_s16 + $0x10] sm:$0xff]  }
 0x573   : > { %v3340_v61 = vpop.eup %3339 }
 0x574   : > { %v1264_v63 = vmul.f32 %v3340_v61, %v3336_v48  ;;  %v1363_v0 = vpop.permute.xlu1 %1362  ;;  %v3246_v61 = vld [vmem:[%s4226_s16 + $0x18] sm:$0xff]  }
 0x575   : > { %3040 = vmatmul.mubr.msk.bf16.vlgmr.msra.gmra.mrb[4].mxu0 %vm1150_vm1, %v1363_v0  ;;  %v3249_v0 = vld [vmem:[%s4226_s16 + $0x30] sm:$0xff]  }
 0x576   : > { %v1266_v1 = vpack.c.bf16 %v1264_v63, %v1264_v63  ;;  %3051 = vmatprep.mubr.msk.bf16.mxu0 %vm3734_vm0, %v3732_v6  ;;  %v3248_v63 = vld [vmem:[%s4226_s16 + $0x28] sm:$0xff]  }
 0x578   : > { %3028 = vmatmul.mubr.msk.bf16.vlgmr.msra.gmra.mrb[12].mxu1 %vm1243_vm3, %v1266_v1  ;;  %v1415_v10 = vpop.permute.xlu1 %1414  ;;  %v3250_v1 = vld [vmem:[%s4226_s16 + $0x38] sm:$0xff]  }
 0x579   : > { %3032 = vmatpush3.bf16.msra.mxu1 %v1319_v4  ;;  %3033 = vmatprep.mubr.msk.bf16.mxu1 %vm3734_vm0, %v3732_v6 }
 0x57a   : > { %3043 = vmatprep.subr.bf16.mxu1 %v3732_v6 }
 0x57b   : > { %v3342_v5 = vpop.eup %3341 }
 0x57c   : > { %v1265_v7 = vmul.f32 %v3342_v5, %v3338_v50 }
 0x57e   : > { %v1267_v8 = vpack.c.bf16 %v1265_v7, %v1265_v7 }
 0x580   : > { %3034 = vmatmul.mubr.msk.bf16.vlgmr.msra.gmra.mrb[16].mxu1 %vm1243_vm3, %v1267_v8 }
 0x581   : > { %3045 = vmatprep.mubr.msk.bf16.mxu1 %vm3734_vm0, %v3732_v6 }
 0x582   : > { %3044 = vmatpush3.bf16.xpose.msra.mxu1 %v1423_v9 }
 0x583   : > { %3055 = vmatprep.subr.bf16.mxu1 %v3732_v6 }
 0x589   : > { %3046 = vmatmul.mubr.msk.bf16.vlgmr.msra.gmra.mrb[20].mxu1 %vm1150_vm1, %v1415_v10 }
 0x58a   : > { %3057 = vmatprep.mubr.msk.bf16.mxu1 %vm3734_vm0, %v3732_v6 }
 0x648   : > { %v1407_v11 = vpop.f32.mrb[4].mxu0 }
 0x649   : > { %v1408_v12 = vadd.f32 %v1407_v11, %v4329_v27  ;;  %v3041_v13 = vpop.f32.mrb[5].mxu0 }
 0x64a   : > { %v1410_v14 = vpop.f32.mrb[6].mxu0 }
 0x64b   : > { %v4364_v15 = vpop.f32.mrb[12].mxu1  ;;  %v3042_v16 = vpop.f32.mrb[7].mxu0  ;;  %v1465_v17 = vsel %vm1243_vm3, %v1408_v12, -inf }
 0x64c   : > { %1466 = vmax.xlane.f32.xlu0 %v1465_v17  ;;  %v3029_v18 = vpop.f32.mrb[13].mxu1 }
 0x64d   : > { %v1312_v19 = vpop.f32.mrb[14].mxu1 }
 0x64e   : > { %v3030_v20 = vpop.f32.mrb[15].mxu1 }
 0x64f   : > { %v2829_v20 = vld [vmem:[%s4714_s11] ss:$0 sm:$0xff] }
 0x653   : > { %v4367_v21 = vpop.f32.mrb[16].mxu1 }
 0x654   : > { %v3035_v22 = vpop.f32.mrb[17].mxu1 }
 0x655   : > { %v1358_v23 = vpop.f32.mrb[18].mxu1 }
 0x656   : > { %v3036_v25 = vpop.f32.mrb[19].mxu1 }
 0x65c   : > { %v1459_v26 = vpop.f32.mrb[20].mxu1 }
 0x65d   : > { %v1460_v28 = vadd.f32 %v1459_v26, %v4333_v35  ;;  %v3047_v27 = vpop.f32.mrb[21].mxu1 }
 0x65e   : > { %v1462_v29 = vpop.f32.mrb[22].mxu1  ;;  %v3251_v27 = vld [vmem:[%s4228_s24] ss:$16 sps:$4 sm:$0xff]  }
 0x65f   : > { %v3048_v30 = vpop.f32.mrb[23].mxu1  ;;  %v1468_v31 = vsel %vm1243_vm3, %v1460_v28, -inf  ;;  %v3253_v29 = vld [vmem:[%s4228_s24 + $0x4] ss:$16 sps:$4 sm:$0xff]  }
 0x660   : > { %1469 = vmax.xlane.f32.xlu1 %v1468_v31  ;;  %v3254_v30 = vld [vmem:[%s4228_s24 + $0x8] ss:$16 sps:$4 sm:$0xff]   ;;  %v3256_v31 = vld [vmem:[%s4228_s24 + $0xc] ss:$16 sps:$4 sm:$0xff]  }
 0x671   : > { %1539 = vrot.lane.b32.xlu1 %v1149_v62, %s3735_s15  ;;  %v3247_v62 = vld [vmem:[%s4226_s16 + $0x20] sm:$0xff]  }
 0x6d9   : > { %v1467_v33 = vpop.xlane.xlu0 %1466 }
 0x6da   : > { %v1471_v34 = vsub.f32 %v1408_v12, %v1467_v33  ;;  %v3259_v33 = vld [vmem:[%s4228_s24 + $0x24] ss:$16 sps:$4 sm:$0xff]  }
 0x6dc   : > { %v1473_v36 = vmul.f32 1.442695, %v1471_v34  ;;  %v3262_v34 = vld [vmem:[%s4228_s24 + $0x2c] ss:$16 sps:$4 sm:$0xff]  }
 0x6de   : > { %3343 = vpow2.f32 %v1473_v36 }
 0x6e8   : > { %v3344_v37 = vpop.eup %3343 }
 0x6e9   : > { %v1477_v38 = vsel %vm1243_vm3, %v3344_v37, 0.0 }
 0x6ea   : > { %1478 = vadd.xlane.f32.xlu0 %v1477_v38 }
 0x6ed   : > { %v1470_v39 = vpop.xlane.xlu1 %1469 }
 0x6ee   : > { %v1472_v40 = vsub.f32 %v1460_v28, %v1470_v39 }
 0x6f0   : > { %v1475_v41 = vmul.f32 1.442695, %v1472_v40 }
 0x6f1   : > { %v1540_v35 = vpop.permute.xlu1 %1539 }
 0x6f2   : > { %3345 = vpow2.f32 %v1475_v41  ;;  %v1545_v42 = vsel %vm1271_vm2, %v1540_v35, 0 }
 0x6f3   : > { %3056 = vmatpush3.bf16.msra.mxu1 %v1545_v42 }
 0x6f4   : > { %1967 = vmatprep.subr.bf16.mxu1 %v3253_v29  ;;  %v3301_v29 = vld [vmem:[%s4230_s10] sm:$0xff]  }
 0x6fc   : > { %v3346_v43 = vpop.eup %3345 }
 0x6fd   : > { %v1480_v44 = vsel %vm1243_vm3, %v3346_v43, 0.0 }
 0x6fe   : > { %1481 = vadd.xlane.f32.xlu0 %v1480_v44  ;;  %v3268_v44 = vld [vmem:[%s4228_s24 + $0x4c] ss:$16 sps:$4 sm:$0xff]  }
 0x714   : > { %1490 = vrot.lane.b32.xlu0 %v4321_v24, %s3735_s15 }
 0x777   : > { %v1479_v45 = vpop.xlane.xlu0 %1478 }
 0x778   : > { %3347 = vrcp.f32 %v1479_v45  ;;  %v3263_v45 = vld [vmem:[%s4228_s24 + $0x40] ss:$16 sps:$4 sm:$0xff]  }
 0x782   : > { %v3348_v46 = vpop.eup %3347 }
 0x783   : > { %v1485_v48 = vmul.f32 %v3348_v46, %v3344_v37  ;;  %v3266_v46 = vld [vmem:[%s4228_s24 + $0x48] ss:$16 sps:$4 sm:$0xff]  }
 0x785   : > { %v1487_v51 = vpack.c.bf16 %v1485_v48, %v1485_v48  ;;  %v3274_v48 = vld [vmem:[%s4228_s24 + $0x6c] ss:$16 sps:$4 sm:$0xff]  }
 0x78b   : > { %v1482_v47 = vpop.xlane.xlu0 %1481 }
 0x78c   : > { %3349 = vrcp.f32 %v1482_v47  ;;  %v3271_v47 = vld [vmem:[%s4228_s24 + $0x64] ss:$16 sps:$4 sm:$0xff]  }
 0x78f   : > { %v1491_v49 = vpop.permute.xlu0 %1490 }
 0x790   : > { %v1496_v50 = vsel %vm1271_vm2, %v1491_v49, 0  ;;  %v3269_v49 = vld [vmem:[%s4228_s24 + $0x60] ss:$16 sps:$4 sm:$0xff]  }
 0x791   : > { %3050 = vmatpush3.bf16.msra.mxu0 %v1496_v50  ;;  %v3272_v50 = vld [vmem:[%s4228_s24 + $0x68] ss:$16 sps:$4 sm:$0xff]  }
 0x792   : > { %3061 = vmatprep.subr.bf16.mxu0 %v3732_v6 }
 0x794   : > { %3052 = vmatmul.mubr.msk.bf16.vlgmr.msra.gmra.mrb[8].mxu0 %vm1243_vm3, %v1487_v51  ;;  %v3277_v51 = vld [vmem:[%s4228_s24 + $0x84] ss:$16 sps:$4 sm:$0xff]  }
 0x795   : > { %3077 = vmatprep.mubr.msk.bf16.mxu0 %vm3734_vm0, %v3732_v6  ;;  %3062 = vmatpush3.bf16.msra.mxu0 %v3243_v54  ;;  %v3283_v54 = vld [vmem:[%s4228_s24 + $0xa4] ss:$16 sps:$4 sm:$0xff]  }
 0x796   : > { %v3350_v24 = vpop.eup %3349  ;;  %3063 = vmatprep.subr.bf16.mxu0 %v3732_v6 }
 0x797   : > { %v1486_v52 = vmul.f32 %v3350_v24, %v3346_v43  ;;  %v3265_v43 = vld [vmem:[%s4228_s24 + $0x44] ss:$16 sps:$4 sm:$0xff]   ;;  %v3280_v24 = vld [vmem:[%s4228_s24 + $0x8c] ss:$16 sps:$4 sm:$0xff]  }
 0x799   : > { %v1488_v53 = vpack.c.bf16 %v1486_v52, %v1486_v52  ;;  %3064 = vmatpush3.bf16.msra.mxu0 %v3244_v55  ;;  %v3275_v52 = vld [vmem:[%s4228_s24 + $0x80] ss:$16 sps:$4 sm:$0xff]   ;;  %v3286_v55 = vld [vmem:[%s4228_s24 + $0xac] ss:$16 sps:$4 sm:$0xff]  }
 0x79a   : > { %3065 = vmatprep.subr.bf16.mxu0 %v3732_v6 }
 0x79b   : > { %3058 = vmatmul.mubr.msk.bf16.vlgmr.msra.gmra.mrb[24].mxu1 %vm1243_vm3, %v1488_v53  ;;  %v3278_v53 = vld [vmem:[%s4228_s24 + $0x88] ss:$16 sps:$4 sm:$0xff]  }
 0x79c   : > { %1999 = vmatprep.mubr.bf16.mxu1 %v3733_v32  ;;  %1968 = vmatpush1.bf16.msra.mxu1 %v3251_v27  ;;  %v3300_v27 = vld [vmem:[%s4230_s10 + $0xc0] sm:$0xff]  }
 0x79d   : > { %3066 = vmatpush3.bf16.msra.mxu0 %v3245_v58  ;;  %1969 = vmatprep.subr.bf16.mxu1 %v3259_v33  ;;  %v3281_v58 = vld [vmem:[%s4228_s24 + $0xa0] ss:$16 sps:$4 sm:$0xff]   ;;  %v3304_v33 = vld [vmem:[%s4230_s10 + $0xc8] sm:$0xff]  }
 0x79e   : > { %3067 = vmatprep.subr.bf16.mxu0 %v3732_v6 }
 0x7a1   : > { %3068 = vmatpush3.bf16.msra.mxu0 %v3246_v61  ;;  %v3284_v61 = vld [vmem:[%s4228_s24 + $0xa8] ss:$16 sps:$4 sm:$0xff]  }
 0x7a2   : > { %3069 = vmatprep.subr.bf16.mxu0 %v3732_v6 }
 0x7a5   : > { %3070 = vmatpush3.bf16.msra.mxu0 %v3247_v62  ;;  %v3289_v62 = vld [vmem:[%s4228_s24 + $0xc4] ss:$16 sps:$4 sm:$0xff]  }
 0x7a6   : > { %3071 = vmatprep.subr.bf16.mxu0 %v3732_v6 }
 0x7a9   : > { %3072 = vmatpush3.bf16.msra.mxu0 %v3248_v63  ;;  %v3292_v63 = vld [vmem:[%s4228_s24 + $0xcc] ss:$16 sps:$4 sm:$0xff]  }
 0x7aa   : > { %3073 = vmatprep.subr.bf16.mxu0 %v3732_v6 }
 0x7ad   : > { %3074 = vmatpush3.bf16.msra.mxu0 %v3249_v0  ;;  %v3287_v0 = vld [vmem:[%s4228_s24 + $0xc0] ss:$16 sps:$4 sm:$0xff]  }
 0x7ae   : > { %3075 = vmatprep.subr.bf16.mxu0 %v3732_v6 }
 0x7b1   : > { %3076 = vmatpush3.bf16.msra.mxu0 %v3250_v1  ;;  %v3290_v1 = vld [vmem:[%s4228_s24 + $0xc8] ss:$16 sps:$4 sm:$0xff]  }
 0x7b2   : > { %2010 = vmatprep.subr.bf16.mxu0 %v3256_v31  ;;  %v3303_v31 = vld [vmem:[%s4230_s10 + $0x48] sm:$0xff]  }
 0x867   : > { %v1532_v4 = vpop.f32.mrb[8].mxu0 }
 0x868   : > { %v3053_v5 = vpop.f32.mrb[9].mxu0 }
 0x869   : > { %v1535_v7 = vpop.f32.mrb[10].mxu0  ;;  %v3293_v5 = vld [vmem:[%s4228_s24 + $0xe0] ss:$16 sps:$4 sm:$0xff]  }
 0x86a   : > { %v3054_v8 = vpop.f32.mrb[11].mxu0  ;;  %v3296_v7 = vld [vmem:[%s4228_s24 + $0xe8] ss:$16 sps:$4 sm:$0xff]  }
 0x86b   : > { %v3298_v8 = vld [vmem:[%s4228_s24 + $0xec] ss:$16 sps:$4 sm:$0xff]  }
 0x86e   : > { %v1581_v9 = vpop.f32.mrb[24].mxu1 }
 0x86f   : > { %v3206_v10 = vpack.i.bf16 %v1581_v9, %v1532_v4  ;;  %v3059_v11 = vpop.f32.mrb[25].mxu1  ;;  %v3295_v4 = vld [vmem:[%s4228_s24 + $0xe4] ss:$16 sps:$4 sm:$0xff]  }
 0x870   : > { %v1584_v12 = vpop.f32.mrb[26].mxu1 }
 0x871   : > { %3207 = vrot.lane.b32.xlu1 %v3206_v10, %s3735_s15  ;;  %v3060_v13 = vpop.f32.mrb[27].mxu1 }
 0x8e3   : > { %v3208_v14 = vpop.permute.xlu1 %3207 }
 0x8e4   : > { %v3210_v16 = vunpack.i.h.bf16 %v3208_v14  ;;  %v3209_v17 = vunpack.i.l.bf16 %v3208_v14 }
 0x8e6   : > { %v1596_v6 = vsel %vm1150_vm1, %v4367_v21, %v3210_v16  ;;  %v1595_v18 = vsel %vm1150_vm1, %v4364_v15, %v3209_v17 }
 0x8e7   : > { %v1597_v19 = vpack.c.bf16 %v1596_v6, %v1595_v18  ;;  %v2838_v6 = vld [vmem:[%s815_s6] ss:$0 sm:$0xff] }
 0x8e9   : > { %3078 = vmatmul.mubr.bf16.vlgmr.msra.gmra.mrb[12].mxu0 %v1597_v19 }
 0x8ea   : > { %2042 = vmatprep.mubr.bf16.mxu0 %v3733_v32  ;;  %2011 = vmatpush1.bf16.msra.mxu0 %v3254_v30  ;;  %v3302_v30 = vld [vmem:[%s4230_s10 + $0x80] sm:$0xff]  }
 0x8eb   : > { %2012 = vmatprep.subr.bf16.mxu0 %v3262_v34  ;;  %v3305_v34 = vld [vmem:[%s4230_s10 + $0x8] sm:$0xff]  }
 0x9bc   : > { %v1703_v22 = vpop.f32.mrb[12].mxu0 }
 0x9bd   : > { %v1704_v21 = vadd.f32 %v2829_v20, %v1703_v22  ;;  %v3079_v23 = vpop.f32.mrb[13].mxu0  ;;  %v2839_v22 = vld [vmem:[%s818_s1] ss:$0 sm:$0xff] }
 0x9be   : > { %v1706_v25 = vpop.f32.mrb[14].mxu0 }
 0x9bf   : > { %v4411_v15 = vadd.f32 %v1704_v21, %v4234_v2  ;;  %v1707_v26 = vadd.f32 %v2829_v20, %v1706_v25  ;;  %v3080_v28 = vpop.f32.mrb[15].mxu0  ;;  %v3257_v2 = vld [vmem:[%s4228_s24 + $0x20] ss:$16 sps:$4 sm:$0xff]  }
 0x9c0   : > { %1970 = vmatpush1.bf16.msra.mxu1 %v3257_v2  ;;  %v3299_v28 = vld [vmem:[%s4230_s10 + $0x40] sm:$0xff]   ;;  %v3306_v2 = vld [vmem:[%s4230_s10 + $0x88] sm:$0xff]  }
 0x9c1   : > { %v4414_v32 = vadd.f32 %v1707_v26, %v4236_v3  ;;  %1714 = vadd.xlane.f32.xlu1 %v4411_v15  ;;  %v3260_v3 = vld [vmem:[%s4228_s24 + $0x28] ss:$16 sps:$4 sm:$0xff]   ;;  %1971 = vmatprep.subr.bf16.mxu1 %v3265_v43  ;;  %v3316_v43 = vld [vmem:[%s4230_s10 + $0xe0] sm:$0xff]  }
 0x9c2   : > { %2013 = vmatpush1.bf16.msra.mxu0 %v3260_v3  ;;  %v3307_v3 = vld [vmem:[%s4230_s10 + $0x50] sm:$0xff]  }
 0x9c3   : > { %1716 = vadd.xlane.f32.xlu0 %v4414_v32  ;;  %2014 = vmatprep.subr.bf16.mxu0 %v3268_v44  ;;  %v3317_v44 = vld [vmem:[%s4230_s10 + $0x20] sm:$0xff]  }
 0x9c4   : > { %1972 = vmatpush1.bf16.msra.mxu1 %v3263_v45  ;;  %v3318_v45 = vld [vmem:[%s4230_s10 + $0xa0] sm:$0xff]  }
 0x9c5   : > { %1973 = vmatprep.subr.bf16.mxu1 %v3271_v47  ;;  %v3320_v47 = vld [vmem:[%s4230_s10 + $0xe8] sm:$0xff]  }
 0x9c6   : > { %2015 = vmatpush1.bf16.msra.mxu0 %v3266_v46  ;;  %v3319_v46 = vld [vmem:[%s4230_s10 + $0x68] sm:$0xff]  }
 0x9c7   : > { %2016 = vmatprep.subr.bf16.mxu0 %v3274_v48  ;;  %v3321_v48 = vld [vmem:[%s4230_s10 + $0x28] sm:$0xff]  }
 0x9c8   : > { %1974 = vmatpush1.bf16.msra.mxu1 %v3269_v49  ;;  %v3322_v49 = vld [vmem:[%s4230_s10 + $0xa8] sm:$0xff]  }
 0x9c9   : > { %1975 = vmatprep.subr.bf16.mxu1 %v3277_v51  ;;  %v3324_v51 = vld [vmem:[%s4230_s10 + $0xf0] sm:$0xff]  }
 0x9ca   : > { %2017 = vmatpush1.bf16.msra.mxu0 %v3272_v50  ;;  %v3323_v50 = vld [vmem:[%s4230_s10 + $0x70] sm:$0xff]  }
 0x9cb   : > { %2018 = vmatprep.subr.bf16.mxu0 %v3280_v24  ;;  %v3325_v24 = vld [vmem:[%s4230_s10 + $0x30] sm:$0xff]  }
 0x9cc   : > { %1976 = vmatpush1.bf16.msra.mxu1 %v3275_v52  ;;  %v3326_v52 = vld [vmem:[%s4230_s10 + $0xb0] sm:$0xff]  }
 0x9cd   : > { %1977 = vmatprep.subr.bf16.mxu1 %v3283_v54  ;;  %v3328_v54 = vld [vmem:[%s4230_s10 + $0xf8] sm:$0xff]  }
 0x9ce   : > { %2019 = vmatpush1.bf16.msra.mxu0 %v3278_v53  ;;  %v3327_v53 = vld [vmem:[%s4230_s10 + $0x78] sm:$0xff]  }
 0x9cf   : > { %2020 = vmatprep.subr.bf16.mxu0 %v3286_v55  ;;  %v3329_v55 = vld [vmem:[%s4230_s10 + $0x38] sm:$0xff]  }
 0x9d0   : > { %1978 = vmatpush1.bf16.msra.mxu1 %v3281_v58  ;;  %v3330_v58 = vld [vmem:[%s4230_s10 + $0xb8] sm:$0xff]  }
 0x9d1   : > { %1979 = vmatprep.subr.bf16.mxu1 %v3289_v62  ;;  %v1801_v62 = vsub.s32 3, %v4300_v56 }
 0x9d2   : > { %2021 = vmatpush1.bf16.msra.mxu0 %v3284_v61  ;;  %v1785_v61 = vld [vmem:[%s4222_s18] sm:$0xf] }
 0x9d3   : > { %2022 = vmatprep.subr.bf16.mxu0 %v3292_v63  ;;  %v1790_v63 = vrot.slane %v1785_v61, %v915_v59 }
 0x9d4   : > { %1980 = vmatpush1.bf16.msra.mxu1 %v3287_v0  ;;  %v1798_v0 = vrot.slane %v1785_v61, %v923_v60 }
 0x9d5   : > { %1981 = vmatprep.subr.bf16.mxu1 %v3295_v4  ;;  %v1802_v4 = vrot.slane %v1785_v61, %v1801_v62 }
 0x9d6   : > { %2023 = vmatpush1.bf16.msra.mxu0 %v3290_v1  ;;  %v1794_v1 = vrot.slane %v1785_v61, %v919_v57 }
 0x9d7   : > { %2024 = vmatprep.subr.bf16.mxu0 %v3298_v8 }
 0x9d8   : > { %1982 = vmatpush1.bf16.msra.mxu1 %v3293_v5 }
 0x9d9   : > { %2949 = vmatprep.subr.bf16.mxu1 %v3299_v28 }
 0x9da   : > { %2025 = vmatpush1.bf16.msra.mxu0 %v3296_v7 }
 0x9db   : > { %2971 = vmatprep.subr.bf16.mxu0 %v3300_v27 }
 0xa4e   : > { %v1715_v36 = vpop.xlane.xlu1 %1714 }
 0xa4f   : > { %v1718_v37 = vmul.f32 0.0078125, %v1715_v36  ;;  %v3308_v36 = vld [vmem:[%s4230_s10 + $0xd0] sm:$0xff]  }
 0xa50   : > { %v1717_v38 = vpop.xlane.xlu0 %1716 }
 0xa51   : > { %v4427_v39 = vsub.f32 %v4411_v15, %v1718_v37  ;;  %v1719_v40 = vmul.f32 0.0078125, %v1717_v38  ;;  %v3309_v37 = vld [vmem:[%s4230_s10 + $0x10] sm:$0xff]  }
 0xa52   : > { %v3310_v38 = vld [vmem:[%s4230_s10 + $0x90] sm:$0xff]  }
 0xa53   : > { %v4430_v41 = vsub.f32 %v4414_v32, %v1719_v40  ;;  %v1722_v35 = vmul.f32 %v4427_v39, %v4427_v39  ;;  %v3312_v40 = vld [vmem:[%s4230_s10 + $0xd8] sm:$0xff]  }
 0xa55   : > { %1724 = vadd.xlane.f32.xlu0 %v1722_v35  ;;  %v1723_v42 = vmul.f32 %v4430_v41, %v4430_v41  ;;  %v3314_v35 = vld [vmem:[%s4230_s10 + $0x98] sm:$0xff]  }
 0xa59   : > { %1726 = vadd.xlane.f32.xlu0 %v1723_v42  ;;  %v3315_v42 = vld [vmem:[%s4230_s10 + $0x60] sm:$0xff]  }
 0xae2   : > { %v1725_v9 = vpop.xlane.xlu0 %1724 }
 0xae3   : > { %v1728_v10 = vmul.f32 0.0078125, %v1725_v9 }
 0xae5   : > { %v1730_v11 = vadd.f32 1e-05, %v1728_v10 }
 0xae6   : > { %v1727_v12 = vpop.xlane.xlu0 %1726 }
 0xae7   : > { %3351 = vrsqrt.f32 %v1730_v11  ;;  %v1729_v13 = vmul.f32 0.0078125, %v1727_v12 }
 0xae9   : > { %v1731_v14 = vadd.f32 1e-05, %v1729_v13 }
 0xaeb   : > { %3353 = vrsqrt.f32 %v1731_v14 }
 0xaf1   : > { %v3352_v16 = vpop.eup %3351 }
 0xaf2   : > { %v1734_v17 = vmul.f32 %v3352_v16, %v4427_v39  ;;  %v3311_v39 = vld [vmem:[%s4230_s10 + $0x58] sm:$0xff]  }
 0xaf4   : > { %v1742_v20 = vmul.f32 %v2838_v6, %v1734_v17 }
 0xaf5   : > { %v3354_v18 = vpop.eup %3353 }
 0xaf6   : > { %v1735_v19 = vmul.f32 %v3354_v18, %v4430_v41  ;;  %v1750_v23 = vadd.f32 %v2839_v22, %v1742_v20  ;;  %v3313_v41 = vld [vmem:[%s4230_s10 + $0x18] sm:$0xff]  }
 0xaf8   : > { %v1743_v21 = vmul.f32 %v2838_v6, %v1735_v19 }
 0xafa   : > { %v1751_v25 = vadd.f32 %v2839_v22, %v1743_v21 }
 0xafc   : > { %v1752_v26 = vpack.c.bf16 %v1751_v25, %v1750_v23 }
 0xafe   : > { %2000 = vmatmul.mubr.bf16.vlgmr.msra.gmra.mrb[28].mxu1 %v1752_v26  ;;  %2043 = vmatmul.mubr.bf16.vlgmr.msra.gmra.mrb[16].mxu0 %v1752_v26 }
 0xaff   : > { %2950 = vmatpush3.bf16.msra.mxu1 %v3301_v29  ;;  %2972 = vmatpush3.bf16.msra.mxu0 %v3302_v30 }
 0xb00   : > { %2951 = vmatprep.subr.bf16.mxu1 %v3303_v31  ;;  %2973 = vmatprep.subr.bf16.mxu0 %v3304_v33 }
 0xb03   : > { %2952 = vmatpush3.bf16.msra.mxu1 %v3305_v34  ;;  %2974 = vmatpush3.bf16.msra.mxu0 %v3306_v2 }
 0xb04   : > { %2953 = vmatprep.subr.bf16.mxu1 %v3307_v3  ;;  %2975 = vmatprep.subr.bf16.mxu0 %v3308_v36 }
 0xb07   : > { %2954 = vmatpush3.bf16.msra.mxu1 %v3309_v37  ;;  %2976 = vmatpush3.bf16.msra.mxu0 %v3310_v38 }
 0xb08   : > { %2955 = vmatprep.subr.bf16.mxu1 %v3311_v39  ;;  %2977 = vmatprep.subr.bf16.mxu0 %v3312_v40 }
 0xb0b   : > { %2956 = vmatpush3.bf16.msra.mxu1 %v3313_v41  ;;  %2978 = vmatpush3.bf16.msra.mxu0 %v3314_v35 }
 0xb0c   : > { %2957 = vmatprep.subr.bf16.mxu1 %v3315_v42  ;;  %2979 = vmatprep.subr.bf16.mxu0 %v3316_v43 }
 0xb0f   : > { %2958 = vmatpush3.bf16.msra.mxu1 %v3317_v44  ;;  %2980 = vmatpush3.bf16.msra.mxu0 %v3318_v45 }
 0xb10   : > { %2959 = vmatprep.subr.bf16.mxu1 %v3319_v46  ;;  %2981 = vmatprep.subr.bf16.mxu0 %v3320_v47 }
 0xb13   : > { %2960 = vmatpush3.bf16.msra.mxu1 %v3321_v48  ;;  %2982 = vmatpush3.bf16.msra.mxu0 %v3322_v49 }
 0xb14   : > { %2961 = vmatprep.subr.bf16.mxu1 %v3323_v50  ;;  %2983 = vmatprep.subr.bf16.mxu0 %v3324_v51 }
 0xb17   : > { %2962 = vmatpush3.bf16.msra.mxu1 %v3325_v24  ;;  %2984 = vmatpush3.bf16.msra.mxu0 %v3326_v52 }
 0xb18   : > { %2963 = vmatprep.subr.bf16.mxu1 %v3327_v53  ;;  %2985 = vmatprep.subr.bf16.mxu0 %v3328_v54 }
 0xb1b   : > { %2964 = vmatpush3.bf16.msra.mxu1 %v3329_v55  ;;  %2986 = vmatpush3.bf16.msra.mxu0 %v3330_v58 }
 0xbd1   : > { %v2001_v5 = vpop.f32.mrb[28].mxu1  ;;  %v2044_v7 = vpop.f32.mrb[16].mxu0 }
 0xbd2   : > { %v4512_v8 = vadd.f32 %v2001_v5, %v1790_v63  ;;  %v4514_v9 = vadd.f32 %v2044_v7, %v1798_v0  ;;  %v2003_v10 = vpop.f32.mrb[29].mxu1  ;;  %v2046_v11 = vpop.f32.mrb[17].mxu0 }
 0xbd3   : > { %v4516_v12 = vadd.f32 %v2003_v10, %v1794_v1  ;;  %v4518_v13 = vadd.f32 %v2046_v11, %v1802_v4  ;;  %v2005_v59 = vpop.f32.mrb[30].mxu1  ;;  %v2048_v14 = vpop.f32.mrb[18].mxu0 }
 0xbd4   : > { %v2053_v60 = vmul.f32 %v4512_v8, %v4512_v8  ;;  %v2055_v56 = vmul.f32 %v4514_v9, %v4514_v9  ;;  %v4524_v57 = vadd.f32 %v2005_v59, %v1790_v63  ;;  %v4526_v16 = vadd.f32 %v2048_v14, %v1798_v0  ;;  %v2007_v17 = vpop.f32.mrb[31].mxu1  ;;  %v2050_v6 = vpop.f32.mrb[19].mxu0 }
 0xbd5   : > { %v2054_v18 = vmul.f32 %v4516_v12, %v4516_v12  ;;  %v2056_v19 = vmul.f32 %v4518_v13, %v4518_v13  ;;  %v4532_v20 = vadd.f32 %v2007_v17, %v1794_v1  ;;  %v4534_v22 = vadd.f32 %v2050_v6, %v1802_v4 }
 0xbd6   : > { %v2061_v21 = vmul.f32 %v2053_v60, %v4512_v8  ;;  %v2063_v23 = vmul.f32 %v2055_v56, %v4514_v9  ;;  %v2057_v25 = vmul.f32 %v4524_v57, %v4524_v57  ;;  %v2059_v26 = vmul.f32 %v4526_v16, %v4526_v16 }
 0xbd7   : > { %v2062_v28 = vmul.f32 %v2054_v18, %v4516_v12  ;;  %v2064_v27 = vmul.f32 %v2056_v19, %v4518_v13  ;;  %v2058_v29 = vmul.f32 %v4532_v20, %v4532_v20  ;;  %v2060_v30 = vmul.f32 %v4534_v22, %v4534_v22 }
 0xbd8   : > { %v2069_v31 = vmul.f32 0.044715, %v2061_v21  ;;  %v2071_v33 = vmul.f32 0.044715, %v2063_v23  ;;  %v2065_v34 = vmul.f32 %v2057_v25, %v4524_v57  ;;  %v2067_v2 = vmul.f32 %v2059_v26, %v4526_v16 }
 0xbd9   : > { %v2070_v3 = vmul.f32 0.044715, %v2062_v28  ;;  %v2072_v36 = vmul.f32 0.044715, %v2064_v27  ;;  %v2066_v37 = vmul.f32 %v2058_v29, %v4532_v20  ;;  %v2068_v38 = vmul.f32 %v2060_v30, %v4534_v22 }
 0xbda   : > { %v2077_v39 = vadd.f32 %v2069_v31, %v4512_v8  ;;  %v2079_v40 = vadd.f32 %v2071_v33, %v4514_v9  ;;  %v2073_v41 = vmul.f32 0.044715, %v2065_v34  ;;  %v2075_v35 = vmul.f32 0.044715, %v2067_v2 }
 0xbdb   : > { %v2078_v42 = vadd.f32 %v2070_v3, %v4516_v12  ;;  %v2080_v43 = vadd.f32 %v2072_v36, %v4518_v13  ;;  %v2074_v44 = vmul.f32 0.044715, %v2066_v37  ;;  %v2076_v45 = vmul.f32 0.044715, %v2068_v38 }
 0xbdc   : > { %v2085_v46 = vmul.f32 0.7978846, %v2077_v39  ;;  %v2087_v47 = vmul.f32 0.7978846, %v2079_v40  ;;  %v2081_v48 = vadd.f32 %v2073_v41, %v4524_v57  ;;  %v2083_v49 = vadd.f32 %v2075_v35, %v4526_v16 }
 0xbdd   : > { %v2086_v50 = vmul.f32 0.7978846, %v2078_v42  ;;  %v2088_v51 = vmul.f32 0.7978846, %v2080_v43  ;;  %v2082_v24 = vadd.f32 %v2074_v44, %v4532_v20  ;;  %v2084_v52 = vadd.f32 %v2076_v45, %v4534_v22 }
 0xbde   : > { %3355 = vtanh.f32 %v2085_v46  ;;  %v2089_v53 = vmul.f32 0.7978846, %v2081_v48  ;;  %v2091_v54 = vmul.f32 0.7978846, %v2083_v49 }
 0xbdf   : > { %3357 = vtanh.f32 %v2087_v47  ;;  %v2090_v55 = vmul.f32 0.7978846, %v2082_v24  ;;  %v2092_v58 = vmul.f32 0.7978846, %v2084_v52 }
 0xbe0   : > { %3359 = vtanh.f32 %v2086_v50 }
 0xbe1   : > { %3361 = vtanh.f32 %v2088_v51 }
 0xbe2   : > { %3363 = vtanh.f32 %v2089_v53 }
 0xbe3   : > { %3365 = vtanh.f32 %v2091_v54 }
 0xbe4   : > { %3367 = vtanh.f32 %v2090_v55 }
 0xbe5   : > { %3369 = vtanh.f32 %v2092_v58 }
 0xbe8   : > { %v3356_v61 = vpop.eup %3355 }
 0xbe9   : > { %v3358_v62 = vpop.eup %3357  ;;  %v2101_v63 = vadd.f32 1.0, %v3356_v61 }
 0xbea   : > { %v3360_v0 = vpop.eup %3359  ;;  %v2103_v1 = vadd.f32 1.0, %v3358_v62 }
 0xbeb   : > { %v3362_v4 = vpop.eup %3361  ;;  %v2102_v5 = vadd.f32 1.0, %v3360_v0  ;;  %v2109_v59 = vmul.f32 0.5, %v2101_v63 }
 0xbec   : > { %v3364_v7 = vpop.eup %3363  ;;  %v2104_v10 = vadd.f32 1.0, %v3362_v4  ;;  %v2111_v56 = vmul.f32 0.5, %v2103_v1 }
 0xbed   : > { %v3366_v11 = vpop.eup %3365  ;;  %v2105_v14 = vadd.f32 1.0, %v3364_v7  ;;  %v2110_v21 = vmul.f32 0.5, %v2102_v5  ;;  %v2117_v28 = vmul.f32 %v2109_v59, %v4512_v8  ;;  %v2906_v5 = vld [vmem:[#allocation8] ss:$0 sm:$0xff] (!%p2905_p0) }
 0xbee   : > { %v3368_v60 = vpop.eup %3367  ;;  %v2107_v17 = vadd.f32 1.0, %v3366_v11  ;;  %v2112_v26 = vmul.f32 0.5, %v2104_v10  ;;  %v2119_v30 = vmul.f32 %v2111_v56, %v4514_v9  ;;  %v2907_v10 = vld [vmem:[#allocation9] ss:$0 sm:$0xff] (!%p2905_p0) }
 0xbef   : > { %v3370_v6 = vpop.eup %3369  ;;  %v2113_v18 = vmul.f32 0.5, %v2105_v14  ;;  %v2106_v19 = vadd.f32 1.0, %v3368_v60  ;;  %v2118_v34 = vmul.f32 %v2110_v21, %v4516_v12  ;;  %v2872_v12 = vld [vmem:[%s825_s12] ss:$0 sm:$0xff] }
 0xbf0   : > { %v2115_v23 = vmul.f32 0.5, %v2107_v17  ;;  %v2108_v25 = vadd.f32 1.0, %v3370_v6  ;;  %v2120_v36 = vmul.f32 %v2112_v26, %v4518_v13 }
 0xbf1   : > { %v2121_v27 = vmul.f32 %v2113_v18, %v4524_v57  ;;  %v2114_v29 = vmul.f32 0.5, %v2106_v19 }
 0xbf2   : > { %v2123_v31 = vmul.f32 %v2115_v23, %v4526_v16  ;;  %v2116_v33 = vmul.f32 0.5, %v2108_v25 }
 0xbf3   : > { %v2122_v2 = vmul.f32 %v2114_v29, %v4532_v20  ;;  %v2125_v3 = vpack.c.bf16 %v2121_v27, %v2117_v28 }
 0xbf4   : > { %v2124_v37 = vmul.f32 %v2116_v33, %v4534_v22  ;;  %v2127_v38 = vpack.c.bf16 %v2123_v31, %v2119_v30 }
 0xbf5   : > { %v2126_v8 = vpack.c.bf16 %v2122_v2, %v2118_v34 }
 0xbf6   : > { %v2128_v39 = vpack.c.bf16 %v2124_v37, %v2120_v36 }
 0xbf7   : > { %2424 = vmatprep.mubr.bf16.mxu1 %v2126_v8 }
 0xbf8   : > { %2465 = vmatprep.mubr.bf16.mxu0 %v2128_v39  ;;  %2425 = vmatmul.mubr.bf16.vlgmr.msra.gmra.mrb[32].mxu1 %v2125_v3 }
 0xbf9   : > { %2466 = vmatmul.mubr.bf16.vlgmr.msra.gmra.mrb[20].mxu0 %v2127_v38 }
 0xccb   : > { %v2965_v9 = vpop.f32.mrb[32].mxu1 }
 0xccc   : > { %v2987_v57 = vpop.f32.mrb[20].mxu0  ;;  %v2966_v16 = vpop.f32.mrb[33].mxu1 }
 0xccd   : > { %v2967_v20 = vadd.f32 %v2966_v16, %v2965_v9  ;;  %v2988_v40 = vpop.f32.mrb[21].mxu0  ;;  %v2968_v13 = vpop.f32.mrb[34].mxu1 }
 0xcce   : > { %v2989_v41 = vadd.f32 %v2988_v40, %v2987_v57  ;;  %v2990_v22 = vpop.f32.mrb[22].mxu0  ;;  %v2969_v35 = vpop.f32.mrb[35].mxu1 }
 0xccf   : > { %v2427_v42 = vadd.f32 %v2967_v20, %v2872_v12  ;;  %v2970_v43 = vadd.f32 %v2969_v35, %v2968_v13  ;;  %v2991_v44 = vpop.f32.mrb[23].mxu0 }
 0xcd0   : > { %v2992_v45 = vadd.f32 %v2991_v44, %v2990_v22 }
 0xcd1   : > { %v2468_v46 = vadd.f32 %v2989_v41, %v2427_v42  ;;  %v2430_v47 = vadd.f32 %v2970_v43, %v2872_v12  ;;  %2481 = sbr.rel (%p2905_p0) target bundleno = 3601 (0xe11), region = 128 }
 0xcd3   : > { %v2474_v48 = vadd.f32 %v2468_v46, %v4411_v15  ;;  %v2471_v49 = vadd.f32 %v2992_v45, %v2430_v47 }
 0xcd5   : > { %2476 = vst [vmem:[#allocation2] sm:$0xff] %v2474_v48  ;;  %v2475_v50 = vadd.f32 %v2471_v49, %v4414_v32  ;;  %2484 = vadd.xlane.f32.xlu0 (!%p2905_p0), %v2474_v48 }
 0xcd7   : > { %2477 = vst [vmem:[#allocation2 + $0x8] sm:$0xff] %v2475_v50 }
 0xcd9   : > { %2486 = vadd.xlane.f32.xlu0 %v2475_v50 }
 0xd62   : > { %v2485_v51 = vpop.xlane.xlu0 %2484 }
 0xd63   : > { %v2488_v24 = vmul.f32 0.0078125, %v2485_v51 }
 0xd65   : > { %v2490_v52 = vsub.f32 %v2474_v48, %v2488_v24 }
 0xd66   : > { %v2487_v53 = vpop.xlane.xlu0 %2486 }
 0xd67   : > { %v2489_v54 = vmul.f32 0.0078125, %v2487_v53  ;;  %v2492_v55 = vmul.f32 %v2490_v52, %v2490_v52 }
 0xd69   : > { %v2491_v58 = vsub.f32 %v2475_v50, %v2489_v54  ;;  %2494 = vadd.xlane.f32.xlu1 %v2492_v55 }
 0xd6b   : > { %v2493_v61 = vmul.f32 %v2491_v58, %v2491_v58 }
 0xd6d   : > { %2496 = vadd.xlane.f32.xlu1 %v2493_v61 }
 0xdf6   : > { %v2495_v15 = vpop.xlane.xlu1 %2494 }
 0xdf7   : > { %v2498_v62 = vmul.f32 0.0078125, %v2495_v15 }
 0xdf9   : > { %v2500_v63 = vadd.f32 1e-05, %v2498_v62 }
 0xdfa   : > { %v2497_v32 = vpop.xlane.xlu1 %2496 }
 0xdfb   : > { %3371 = vrsqrt.f32 %v2500_v63  ;;  %v2499_v0 = vmul.f32 0.0078125, %v2497_v32 }
 0xdfd   : > { %v2501_v1 = vadd.f32 1e-05, %v2499_v0 }
 0xdff   : > { %3373 = vrsqrt.f32 %v2501_v1 }
 0xe05   : > { %v3372_v4 = vpop.eup %3371 }
 0xe06   : > { %v2504_v7 = vmul.f32 %v3372_v4, %v2490_v52 }
 0xe08   : > { %v2512_v11 = vmul.f32 %v2906_v5, %v2504_v7 }
 0xe09   : > { %v3374_v59 = vpop.eup %3373 }
 0xe0a   : > { %v2520_v14 = vadd.f32 %v2907_v10, %v2512_v11  ;;  %v2505_v60 = vmul.f32 %v3374_v59, %v2491_v58 }
 0xe0c   : > { %2522 = vst [vmem:[#allocation16] sm:$0xff] %v2520_v14  ;;  %v2513_v56 = vmul.f32 %v2906_v5, %v2505_v60 }
 0xe0e   : > { %v2521_v17 = vadd.f32 %v2907_v10, %v2513_v56 }
 0xe10   : > { %2523 = vst [vmem:[#allocation16 + $0x8] sm:$0xff] %v2521_v17 }
 0xe11 PF: > { %p3153_p4 = scmp.eq.s32.totalorder %s3843_s25, 1  ;;  %s3736_s12 = smov [#allocation16]  }
 0xe12   : > { %s2530_s8 = sshll.u32 %s3736_s12, 4  ;;  %s2531_s8 = int_to_ptr.vmem [resolvable:$true] %s2530_s8 }
 0xe13   : > { %s3637_s19 = scalar_lea.vmem %s2531_s8, 256  ;;  %p3644_p7 = scmp.lt.s32.totalorder %s2531_s8, %s2531_s8 }
 0xe14   : > { %p3638_p2 = scmp.ne.s32.totalorder %s2531_s8, %s3637_s19  ;;  %p3645_p5 = scmp.lt.s32.totalorder %s3637_s19, %s3637_s19 }
 0xe16   : > { %p3639_p6 = pnand %p3638_p2, %p3153_p4  ;;  %p3646_p9 = por %p3645_p5, %p3644_p7 }
 0xe18   : > { %p3640_p13 = pneg %p3639_p6 }
 0xe1a   : > { %p3647_p12 = pnand %p3646_p9, %p3640_p13 }
 0xe1c   : > { %3650 = shalt.err (!%p3647_p12)
}
 0xe1d   : > { %s4718_s16 = sld [smem:[#allocation39_spill]] }
 0xe23   : > { %s3651_s24 = scalar_lea.hbm %s4718_s16, 256 }
 0xe24   : > { %p3652_p11 = scmp.ne.s32.totalorder %s4718_s16, %s3651_s24  ;;  %p3657_p10 = scmp.lt.u32.totalorder %s3651_s24, %s4718_s16 }
 0xe26   : > { %p3653_p3 = pnand %p3652_p11, %p3153_p4 }
 0xe28   : > { %p3654_p8 = pneg %p3653_p3 }
 0xe2a   : > { %p3659_p1 = pnand %p3657_p10, %p3654_p8 }
 0xe2c   : > { %3662 = shalt.err (!%p3659_p1)
}
 0xe2d   : > { %s3737_s9 = smov 128   ;;  %s3738_s13 = smov 8  }
 0xe2e   : > { %3112 = dma.vmem_to_hbm [thread:$0]  (%p3153_p4), %s2531_s8, 256, %s4718_s16, [#allocation5], %s3737_s9, %s3737_s9, %s3738_s13  }
 0xe2f   : > { %3696 = dma.done.wait (%p3153_p4), [#allocation5], 256  }
 0xe30   : > { %3698 = vsyncadd (%p3153_p4), [#allocation5], 4294967040 }
 0xe31 PF: > { %s4719_s24 = sld [smem:[#allocation22_spill]]  ;;  %s4720_s26 = sld [smem:[#allocation23_spill]] }
 0xe32   : > { %s4721_s21 = smov %s3705_s22  ;;  %s4722_s22 = smov %s3709_s23 }
 0xe37   : > { %p27_p0 = scmp.ge.s32.totalorder %s4719_s24, 4   ;;  %s4723_s23 = smov %s4720_s26 }
 0xe39   :  { %29 = sbr.rel (!%p27_p0) target bundleno = 22 (0x16), region = 209 }
 0xe40   :  { %2546 = vsyncpa [#allocation4], 1 }
 0xe41   :  { %2548 = vsyncpa [#allocation4 + $0x1], 1 }
 0xe42   :  { %2549 = vsyncpa [#allocation7], 1 }
 0xe43   :  { %2550 = vsyncpa [#allocation10], 1 }
 0xe44   :  { %2551 = vsyncpa [#allocation5], 1 }
 0xe45   :  { %2553 = vsyncpa [#allocation5 + $0x1], 1 }

</bundles_post_ra>
